<compile_context>
chip_gen: v5e
topology: v5e:2x2
jax: 0.10.0
libtpu: 0.0.40
codegen_flags: <defaults>
</compile_context>

<pallas_src>
import math

import jax
import jax.numpy as jnp
from jax import lax
from jax.experimental import pallas as pl
from jax.experimental.pallas import tpu as pltpu


def _reward_kernel(
    ids_ref,          # VMEM [TB*S, 1]  int32   token ids (column layout)
    msel_ref,         # VMEM [TB, TB*S] f32     mask-selection matrix (1/len folded in)
    emb_ref,          # VMEM [V_pad, H] bf16    full embedding table (VMEM resident)
    wp_ref, bp_ref,   # VMEM [H, H] bf16, [1, H] f32
    w1_ref, b1_ref,   # VMEM [H, 512] bf16, [1, 512] f32
    w2_ref, b2_ref,   # VMEM [512, 256] bf16, [1, 256] f32
    w3t_ref, b3_ref,  # VMEM [1, 256] f32, [1, 1] f32
    out_ref,          # VMEM [TB, 1] f32
):
    TBS = ids_ref.shape[0]
    V = emb_ref.shape[0]

    # ---- embedding lookup as a one-hot bf16 MXU matmul --------------------
    # onehot[t, v] = (ids[t] == v); exactly 0/1 in bf16, so e_tok rows are
    # bit-exact bf16 table rows accumulated in f32.
    vocab_iota = lax.broadcasted_iota(jnp.int32, (TBS, V), 1)
    onehot = jnp.where(ids_ref[...] == vocab_iota, 1.0, 0.0).astype(jnp.bfloat16)
    e_tok = jnp.dot(onehot, emb_ref[...],
                    preferred_element_type=jnp.float32)          # [TB*S, H]

    # ---- masked mean over S as a second MXU contraction -------------------
    # msel[b, t] = attention_mask[b, s] / len[b] if t == b*S + s else 0,
    # so mean_h = msel @ e_tok is the attention-masked mean embedding.
    mean_h = jnp.dot(msel_ref[...], e_tok,
                     preferred_element_type=jnp.float32)         # [TB, H]

    # ---- BERT-style pooler: tanh(x @ Wp + bp) — bf16 MXU, f32 accumulate --
    pooled = jnp.tanh(
        jnp.dot(mean_h.astype(jnp.bfloat16), wp_ref[...],
                preferred_element_type=jnp.float32) + bp_ref[...])

    # ---- reward head MLP (Dropout = identity in eval) ----------------------
    h1 = jnp.maximum(
        jnp.dot(pooled.astype(jnp.bfloat16), w1_ref[...],
                preferred_element_type=jnp.float32) + b1_ref[...], 0.0)
    h2 = jnp.maximum(
        jnp.dot(h1.astype(jnp.bfloat16), w2_ref[...],
                preferred_element_type=jnp.float32) + b2_ref[...], 0.0)

    # Final Linear(256, 1): elementwise multiply + lane reduce (avoids a
    # 1-wide MXU matmul).  W3 comes in pre-transposed as [1, 256].
    reward = jnp.sum(h2 * w3t_ref[...], axis=-1, keepdims=True) + b3_ref[...]
    out_ref[...] = reward.astype(out_ref.dtype)


def reward_model_forward(input_ids, attention_mask, params, *, batch_tile=8):
    """Runs the (synthetic-encoder) RewardModel forward pass.

    input_ids:      int32 [B, S]
    attention_mask: int32 [B, S]   (0 / 1)
    returns:        float32 [B]
    """
    B, S = input_ids.shape
    V, H = params["embedding"].shape
    H1 = params["w1"].shape[1]
    H2 = params["w2"].shape[1]

    # TB=8 keeps grid=B//TB >= 2 at B=16 so both v7x TCs get work; raise
    # batch_tile for better MXU row fill when B is larger (v5e/v6e).
    TB = min(batch_tile, B)
    assert TB % 8 == 0 and B % TB == 0, "batch tile must be a multiple of 8 that divides B"
    TBS = TB * S
    n_tiles = B // TB

    # ---- wrapper-side prep (cheap XLA ops) --------------------------------
    # bf16 table, zero-padded so the one-hot contraction dim is lane-aligned.
    V_pad = ((V + 127) // 128) * 128
    emb_bf16 = jnp.pad(params["embedding"].astype(jnp.bfloat16),
                       ((0, V_pad - V), (0, 0)))                  # [V_pad, H]

    # Token ids as a column so the in-kernel one-hot compare needs no reshape.
    ids_col = input_ids.astype(jnp.int32).reshape(B * S, 1)       # [B*S, 1]

    # Mask-selection matrix: block-diagonal per batch tile, with 1/len folded
    # in, so the masked mean is a single MXU contraction in-kernel.
    m = attention_mask.astype(jnp.float32)
    inv_len = 1.0 / jnp.maximum(jnp.sum(m, axis=1, keepdims=True), 1.0)
    mask_scaled = m * inv_len                                     # [B, S]
    t_idx = jnp.arange(TBS)
    local_b = (jnp.arange(B) % TB)[:, None]                       # [B, 1]
    sel = (t_idx[None, :] // S) == local_b                        # [B, TB*S]
    msel = jnp.where(sel, mask_scaled[:, t_idx % S], 0.0).astype(jnp.float32)

    wp = params["wp"].astype(jnp.bfloat16)
    w1 = params["w1"].astype(jnp.bfloat16)
    w2 = params["w2"].astype(jnp.bfloat16)
    w3t = params["w3"].T.astype(jnp.float32)                      # [1, 256]

    # ---- derived VMEM budget (double-buffered blocks + intermediate headroom)
    def nbytes(shape, dtype):
        return math.prod(shape) * jnp.dtype(dtype).itemsize

    io_bytes = (
        nbytes((TBS, 1), jnp.int32) + nbytes((TB, TBS), jnp.float32)
        + nbytes((V_pad, H), jnp.bfloat16)
        + nbytes((H, H), jnp.bfloat16) + nbytes((1, H), jnp.float32)
        + nbytes((H, H1), jnp.bfloat16) + nbytes((1, H1), jnp.float32)
        + nbytes((H1, H2), jnp.bfloat16) + nbytes((1, H2), jnp.float32)
        + nbytes((1, H2), jnp.float32) + nbytes((1, 1), jnp.float32)
        + nbytes((TB, 1), jnp.float32))
    vmem_limit = 2 * io_bytes + (16 << 20)   # fits comfortably in v7x's 64 MiB

    grid_spec = pltpu.PrefetchScalarGridSpec(
        num_scalar_prefetch=0,
        grid=(n_tiles,),
        in_specs=[
            pl.BlockSpec((TBS, 1),   lambda i: (i, 0)),   # token ids (column)
            pl.BlockSpec((TB, TBS),  lambda i: (i, 0)),   # mask-selection matrix
            pl.BlockSpec((V_pad, H), lambda i: (0, 0)),   # embedding table (grid-invariant)
            pl.BlockSpec((H, H),     lambda i: (0, 0)),   # Wp
            pl.BlockSpec((1, H),     lambda i: (0, 0)),   # bp
            pl.BlockSpec((H, H1),    lambda i: (0, 0)),   # W1
            pl.BlockSpec((1, H1),    lambda i: (0, 0)),   # b1
            pl.BlockSpec((H1, H2),   lambda i: (0, 0)),   # W2
            pl.BlockSpec((1, H2),    lambda i: (0, 0)),   # b2
            pl.BlockSpec((1, H2),    lambda i: (0, 0)),   # W3^T
            pl.BlockSpec((1, 1),     lambda i: (0, 0)),   # b3
        ],
        out_specs=pl.BlockSpec((TB, 1), lambda i: (i, 0)),
    )

    out = pl.pallas_call(
        _reward_kernel,
        out_shape=jax.ShapeDtypeStruct((B, 1), jnp.float32),
        grid_spec=grid_spec,
        compiler_params=pltpu.CompilerParams(
            dimension_semantics=("parallel",),   # batch tiles shard across TCs on v7x
            vmem_limit_bytes=int(vmem_limit),
        ),
    )(ids_col, msel, emb_bf16,
      wp, params["bp"], w1, params["b1"], w2, params["b2"], w3t, params["b3"])

    return out[:, 0]   # squeeze(-1)


def init_params(key, vocab, hidden, h1=512, h2=256):
    ks = jax.random.split(key, 6)

    def dense(k, fan_in, fan_out):
        scale = 1.0 / jnp.sqrt(jnp.float32(fan_in))
        return jax.random.normal(k, (fan_in, fan_out), jnp.float32) * scale

    return {
        "embedding": jax.random.normal(ks[0], (vocab, hidden), jnp.float32) * 0.02,
        "wp": dense(ks[1], hidden, hidden),
        "bp": jnp.zeros((1, hidden), jnp.float32),
        "w1": dense(ks[2], hidden, h1),
        "b1": jnp.zeros((1, h1), jnp.float32),
        "w2": dense(ks[3], h1, h2),
        "b2": jnp.zeros((1, h2), jnp.float32),
        "w3": dense(ks[4], h2, 1),
        "b3": jnp.zeros((1, 1), jnp.float32),
    }


if __name__ == "__main__":
    B, S, H, VOCAB = 16, 16, 128, 1000

    key = jax.random.PRNGKey(0)
    k_tok, k_len, k_par = jax.random.split(key, 3)

    input_ids = jax.random.randint(k_tok, (B, S), 0, VOCAB, dtype=jnp.int32)
    lengths = jax.random.randint(k_len, (B,), 4, S + 1, dtype=jnp.int32)
    attention_mask = (jnp.arange(S)[None, :] < lengths[:, None]).astype(jnp.int32)

    params = init_params(k_par, VOCAB, H)

    fwd = jax.jit(lambda ii, am, p: reward_model_forward(ii, am, p, batch_tile=8))
    rewards = jax.block_until_ready(fwd(input_ids, attention_mask, params))

    # Reference in plain JAX, matching the kernel's quantization choices
    # (bf16 embedding rows, bf16 weights, f32 accumulation).
    emb_bf16 = params["embedding"].astype(jnp.bfloat16)
    gathered = jnp.take(emb_bf16, input_ids, axis=0).astype(jnp.float32)  # [B, S, H]
    m = attention_mask.astype(jnp.float32)
    inv_len = 1.0 / jnp.maximum(m.sum(axis=1, keepdims=True), 1.0)
    mean_h = jnp.sum(gathered * (m * inv_len)[:, :, None], axis=1)        # [B, H]
    pooled = jnp.tanh(
        jnp.dot(mean_h.astype(jnp.bfloat16), params["wp"].astype(jnp.bfloat16),
                preferred_element_type=jnp.float32) + params["bp"])
    h1 = jnp.maximum(
        jnp.dot(pooled.astype(jnp.bfloat16), params["w1"].astype(jnp.bfloat16),
                preferred_element_type=jnp.float32) + params["b1"], 0.0)
    h2 = jnp.maximum(
        jnp.dot(h1.astype(jnp.bfloat16), params["w2"].astype(jnp.bfloat16),
                preferred_element_type=jnp.float32) + params["b2"], 0.0)
    ref = (jnp.sum(h2 * params["w3"][:, 0][None, :], axis=-1, keepdims=True)
           + params["b3"])[:, 0]

    assert rewards.shape == (B,)
    assert jnp.allclose(rewards, ref, atol=2e-3, rtol=2e-2), (
        f"max abs err {jnp.max(jnp.abs(rewards - ref))}")
    print("KERNEL_OK")
</pallas_src>

<mosaic_0001>
module attributes {stable_mosaic.version = 11 : i64} {
  func.func @_reward_kernel(%arg0: i32, %arg1: memref<128x1xi32, #tpu.memory_space<vmem>>, %arg2: memref<8x128xf32, #tpu.memory_space<vmem>>, %arg3: memref<1024x128xbf16, #tpu.memory_space<vmem>>, %arg4: memref<128x128xbf16, #tpu.memory_space<vmem>>, %arg5: memref<1x128xf32, #tpu.memory_space<vmem>>, %arg6: memref<128x512xbf16, #tpu.memory_space<vmem>>, %arg7: memref<1x512xf32, #tpu.memory_space<vmem>>, %arg8: memref<512x256xbf16, #tpu.memory_space<vmem>>, %arg9: memref<1x256xf32, #tpu.memory_space<vmem>>, %arg10: memref<1x256xf32, #tpu.memory_space<vmem>>, %arg11: memref<1x1xf32, #tpu.memory_space<vmem>>, %arg12: memref<8x1xf32, #tpu.memory_space<vmem>>) attributes {dimension_semantics = [#tpu.dimension_semantics<parallel>], iteration_bounds = array<i64: 2>, scalar_prefetch = 0 : i64, scratch_operands = 0 : i64, tpu.core_type = #tpu.core_type<tc>, window_params = [{transform_indices = @transform_0, window_bounds = array<i64: 128, 1>}, {transform_indices = @transform_1, window_bounds = array<i64: 8, 128>}, {pipeline_mode = #tpu.pipeline_mode<synchronous>, transform_indices = @transform_2, window_bounds = array<i64: 1024, 128>}, {pipeline_mode = #tpu.pipeline_mode<synchronous>, transform_indices = @transform_3, window_bounds = array<i64: 128, 128>}, {pipeline_mode = #tpu.pipeline_mode<synchronous>, transform_indices = @transform_4, window_bounds = array<i64: 1, 128>}, {pipeline_mode = #tpu.pipeline_mode<synchronous>, transform_indices = @transform_5, window_bounds = array<i64: 128, 512>}, {pipeline_mode = #tpu.pipeline_mode<synchronous>, transform_indices = @transform_6, window_bounds = array<i64: 1, 512>}, {pipeline_mode = #tpu.pipeline_mode<synchronous>, transform_indices = @transform_7, window_bounds = array<i64: 512, 256>}, {pipeline_mode = #tpu.pipeline_mode<synchronous>, transform_indices = @transform_8, window_bounds = array<i64: 1, 256>}, {pipeline_mode = #tpu.pipeline_mode<synchronous>, transform_indices = @transform_9, window_bounds = array<i64: 1, 256>}, {pipeline_mode = #tpu.pipeline_mode<synchronous>, transform_indices = @transform_10, window_bounds = array<i64: 1, 1>}, {transform_indices = @transform_11, window_bounds = array<i64: 8, 1>}]} {
    %0 = tpu.iota {dimensions = array<i32: 1>} : vector<128x1024xi32>
    %c0 = arith.constant 0 : index
    %c0_0 = arith.constant 0 : index
    %1 = vector.load %arg1[%c0, %c0_0] : memref<128x1xi32, #tpu.memory_space<vmem>>, vector<128x1xi32>
    %2 = vector.broadcast %1 : vector<128x1xi32> to vector<128x1024xi32>
    %3 = arith.cmpi eq, %2, %0 : vector<128x1024xi32>
    %cst = arith.constant 1.000000e+00 : f32
    %cst_1 = arith.constant 0.000000e+00 : f32
    %4 = vector.broadcast %cst : f32 to vector<128x1024xf32>
    %5 = vector.broadcast %cst_1 : f32 to vector<128x1024xf32>
    %6 = arith.select %3, %4, %5 : vector<128x1024xi1>, vector<128x1024xf32>
    %7 = arith.truncf %6 : vector<128x1024xf32> to vector<128x1024xbf16>
    %c0_2 = arith.constant 0 : index
    %c0_3 = arith.constant 0 : index
    %8 = vector.load %arg3[%c0_2, %c0_3] : memref<1024x128xbf16, #tpu.memory_space<vmem>>, vector<1024x128xbf16>
    %cst_4 = arith.constant dense<0.000000e+00> : vector<128x128xf32>
    %9 = tpu.matmul %7, %8, %cst_4 {dimension_numbers = #tpu.dot_dimension_numbers<[1], [0], [0], [1], [0, 0, 1, 1], [], []>} : vector<128x1024xbf16>, vector<1024x128xbf16>, vector<128x128xf32> -> vector<128x128xf32>
    %c0_5 = arith.constant 0 : index
    %c0_6 = arith.constant 0 : index
    %10 = vector.load %arg2[%c0_5, %c0_6] : memref<8x128xf32, #tpu.memory_space<vmem>>, vector<8x128xf32>
    %cst_7 = arith.constant dense<0.000000e+00> : vector<8x128xf32>
    %11 = tpu.matmul %10, %9, %cst_7 {dimension_numbers = #tpu.dot_dimension_numbers<[1], [0], [0], [1], [0, 0, 1, 1], [], []>} : vector<8x128xf32>, vector<128x128xf32>, vector<8x128xf32> -> vector<8x128xf32>
    %12 = arith.truncf %11 : vector<8x128xf32> to vector<8x128xbf16>
    %c0_8 = arith.constant 0 : index
    %c0_9 = arith.constant 0 : index
    %13 = vector.load %arg4[%c0_8, %c0_9] : memref<128x128xbf16, #tpu.memory_space<vmem>>, vector<128x128xbf16>
    %cst_10 = arith.constant dense<0.000000e+00> : vector<8x128xf32>
    %14 = tpu.matmul %12, %13, %cst_10 {dimension_numbers = #tpu.dot_dimension_numbers<[1], [0], [0], [1], [0, 0, 1, 1], [], []>} : vector<8x128xbf16>, vector<128x128xbf16>, vector<8x128xf32> -> vector<8x128xf32>
    %c0_11 = arith.constant 0 : index
    %c0_12 = arith.constant 0 : index
    %15 = vector.load %arg5[%c0_11, %c0_12] : memref<1x128xf32, #tpu.memory_space<vmem>>, vector<1x128xf32>
    %16 = vector.broadcast %15 : vector<1x128xf32> to vector<8x128xf32>
    %17 = arith.addf %14, %16 : vector<8x128xf32>
    %18 = math.tanh %17 : vector<8x128xf32>
    %19 = arith.truncf %18 : vector<8x128xf32> to vector<8x128xbf16>
    %c0_13 = arith.constant 0 : index
    %c0_14 = arith.constant 0 : index
    %20 = vector.load %arg6[%c0_13, %c0_14] : memref<128x512xbf16, #tpu.memory_space<vmem>>, vector<128x512xbf16>
    %cst_15 = arith.constant dense<0.000000e+00> : vector<8x512xf32>
    %21 = tpu.matmul %19, %20, %cst_15 {dimension_numbers = #tpu.dot_dimension_numbers<[1], [0], [0], [1], [0, 0, 1, 1], [], []>} : vector<8x128xbf16>, vector<128x512xbf16>, vector<8x512xf32> -> vector<8x512xf32>
    %c0_16 = arith.constant 0 : index
    %c0_17 = arith.constant 0 : index
    %22 = vector.load %arg7[%c0_16, %c0_17] : memref<1x512xf32, #tpu.memory_space<vmem>>, vector<1x512xf32>
    %23 = vector.broadcast %22 : vector<1x512xf32> to vector<8x512xf32>
    %24 = arith.addf %21, %23 : vector<8x512xf32>
    %cst_18 = arith.constant 0.000000e+00 : f32
    %25 = vector.broadcast %cst_18 : f32 to vector<8x512xf32>
    %26 = arith.maximumf %24, %25 : vector<8x512xf32>
    %27 = arith.truncf %26 : vector<8x512xf32> to vector<8x512xbf16>
    %c0_19 = arith.constant 0 : index
    %c0_20 = arith.constant 0 : index
    %28 = vector.load %arg8[%c0_19, %c0_20] : memref<512x256xbf16, #tpu.memory_space<vmem>>, vector<512x256xbf16>
    %cst_21 = arith.constant dense<0.000000e+00> : vector<8x256xf32>
    %29 = tpu.matmul %27, %28, %cst_21 {dimension_numbers = #tpu.dot_dimension_numbers<[1], [0], [0], [1], [0, 0, 1, 1], [], []>} : vector<8x512xbf16>, vector<512x256xbf16>, vector<8x256xf32> -> vector<8x256xf32>
    %c0_22 = arith.constant 0 : index
    %c0_23 = arith.constant 0 : index
    %30 = vector.load %arg9[%c0_22, %c0_23] : memref<1x256xf32, #tpu.memory_space<vmem>>, vector<1x256xf32>
    %31 = vector.broadcast %30 : vector<1x256xf32> to vector<8x256xf32>
    %32 = arith.addf %29, %31 : vector<8x256xf32>
    %cst_24 = arith.constant 0.000000e+00 : f32
    %33 = vector.broadcast %cst_24 : f32 to vector<8x256xf32>
    %34 = arith.maximumf %32, %33 : vector<8x256xf32>
    %c0_25 = arith.constant 0 : index
    %c0_26 = arith.constant 0 : index
    %35 = vector.load %arg10[%c0_25, %c0_26] : memref<1x256xf32, #tpu.memory_space<vmem>>, vector<1x256xf32>
    %36 = vector.broadcast %35 : vector<1x256xf32> to vector<8x256xf32>
    %37 = arith.mulf %34, %36 : vector<8x256xf32>
    %cst_27 = arith.constant dense<0.000000e+00> : vector<8xf32>
    %38 = vector.multi_reduction <add>, %37, %cst_27 [1] : vector<8x256xf32> to vector<8xf32>
    %39 = vector.shape_cast %38 : vector<8xf32> to vector<8x1xf32>
    %c0_28 = arith.constant 0 : index
    %c0_29 = arith.constant 0 : index
    %40 = vector.load %arg11[%c0_28, %c0_29] : memref<1x1xf32, #tpu.memory_space<vmem>>, vector<1x1xf32>
    %41 = vector.broadcast %40 : vector<1x1xf32> to vector<8x1xf32>
    %42 = arith.addf %39, %41 : vector<8x1xf32>
    %c0_30 = arith.constant 0 : index
    %c0_31 = arith.constant 0 : index
    %43 = vector.load %arg12[%c0_30, %c0_31] : memref<8x1xf32, #tpu.memory_space<vmem>>, vector<8x1xf32>
    tpu.vector_store %arg12[%c0_30, %c0_31], %42 {strides = array<i32>} : memref<8x1xf32, #tpu.memory_space<vmem>>, vector<8x1xf32>,
    return
  }
  func.func @transform_0(%arg0: i32) -> (i32, i32) {
    %c0_i32 = arith.constant 0 : i32
    %c0_i32_0 = arith.constant 0 : i32
    return %arg0, %c0_i32 : i32, i32
  }
  func.func @transform_1(%arg0: i32) -> (i32, i32) {
    %c0_i32 = arith.constant 0 : i32
    %c0_i32_0 = arith.constant 0 : i32
    return %arg0, %c0_i32 : i32, i32
  }
  func.func @transform_2(%arg0: i32) -> (i32, i32) {
    %c0_i32 = arith.constant 0 : i32
    %c0_i32_0 = arith.constant 0 : i32
    %c0_i32_1 = arith.constant 0 : i32
    return %c0_i32, %c0_i32_0 : i32, i32
  }
  func.func @transform_3(%arg0: i32) -> (i32, i32) {
    %c0_i32 = arith.constant 0 : i32
    %c0_i32_0 = arith.constant 0 : i32
    %c0_i32_1 = arith.constant 0 : i32
    return %c0_i32, %c0_i32_0 : i32, i32
  }
  func.func @transform_4(%arg0: i32) -> (i32, i32) {
    %c0_i32 = arith.constant 0 : i32
    %c0_i32_0 = arith.constant 0 : i32
    %c0_i32_1 = arith.constant 0 : i32
    return %c0_i32, %c0_i32_0 : i32, i32
  }
  func.func @transform_5(%arg0: i32) -> (i32, i32) {
    %c0_i32 = arith.constant 0 : i32
    %c0_i32_0 = arith.constant 0 : i32
    %c0_i32_1 = arith.constant 0 : i32
    return %c0_i32, %c0_i32_0 : i32, i32
  }
  func.func @transform_6(%arg0: i32) -> (i32, i32) {
    %c0_i32 = arith.constant 0 : i32
    %c0_i32_0 = arith.constant 0 : i32
    %c0_i32_1 = arith.constant 0 : i32
    return %c0_i32, %c0_i32_0 : i32, i32
  }
  func.func @transform_7(%arg0: i32) -> (i32, i32) {
    %c0_i32 = arith.constant 0 : i32
    %c0_i32_0 = arith.constant 0 : i32
    %c0_i32_1 = arith.constant 0 : i32
    return %c0_i32, %c0_i32_0 : i32, i32
  }
  func.func @transform_8(%arg0: i32) -> (i32, i32) {
    %c0_i32 = arith.constant 0 : i32
    %c0_i32_0 = arith.constant 0 : i32
    %c0_i32_1 = arith.constant 0 : i32
    return %c0_i32, %c0_i32_0 : i32, i32
  }
  func.func @transform_9(%arg0: i32) -> (i32, i32) {
    %c0_i32 = arith.constant 0 : i32
    %c0_i32_0 = arith.constant 0 : i32
    %c0_i32_1 = arith.constant 0 : i32
    return %c0_i32, %c0_i32_0 : i32, i32
  }
  func.func @transform_10(%arg0: i32) -> (i32, i32) {
    %c0_i32 = arith.constant 0 : i32
    %c0_i32_0 = arith.constant 0 : i32
    %c0_i32_1 = arith.constant 0 : i32
    return %c0_i32, %c0_i32_0 : i32, i32
  }
  func.func @transform_11(%arg0: i32) -> (i32, i32) {
    %c0_i32 = arith.constant 0 : i32
    %c0_i32_0 = arith.constant 0 : i32
    return %arg0, %c0_i32 : i32, i32
  }
}

</mosaic_0001>

<bundles_post_ra>
// kernel: _lambda_.1
= control target key start
LH: loop header
LB: loop body
LE: loop exit
PB: predicated region body
PF: predicated region fallthrough
CT: control target
= control target key end

     0   :  { %s3718_s19 = smov 0   ;;  %s5377_s0 = inlined_call_operand.vmem [shape: s32[256,1], index: 0, kind: input, shape index: {}]   ;;  %s5378_s1 = inlined_call_operand.vmem [shape: f32[16,128], index: 1, kind: input, shape index: {}]   ;;  %s5379_s2 = inlined_call_operand.vmem [shape: bf16[1024,128], index: 2, kind: input, shape index: {}]   ;;  %s5380_s3 = inlined_call_operand.vmem [shape: bf16[128,128], index: 3, kind: input, shape index: {}]   ;;  %s5381_s4 = inlined_call_operand.vmem [shape: f32[1,128], index: 4, kind: input, shape index: {}]   ;;  %s5382_s5 = inlined_call_operand.vmem [shape: bf16[128,512], index: 5, kind: input, shape index: {}]   ;;  %s5383_s6 = inlined_call_operand.vmem [shape: f32[1,512], index: 6, kind: input, shape index: {}]   ;;  %s5384_s7 = inlined_call_operand.vmem [shape: bf16[512,256], index: 7, kind: input, shape index: {}]   ;;  %s5385_s8 = inlined_call_operand.vmem [shape: f32[1,256], index: 8, kind: input, shape index: {}]   ;;  %s5386_s9 = inlined_call_operand.vmem [shape: f32[1,256], index: 9, kind: input, shape index: {}]   ;;  %s5387_s10 = inlined_call_operand.<no memory space> [shape: f32[1,1], index: 10, kind: input, shape index: {}]   ;;  %s5388_s11 = inlined_call_operand.vmem [shape: f32[16,1], index: 11, kind: output, shape index: {}]  }
   0x1   :  { %v16_v0 = vstv %s5387_s10 }
   0x2   :  { %17 = vst [vmem:[#allocation2] sm:$0x1] %v16_v0 }
   0x3 LB: > { %s3724_s20 = sadd.s32 4294967295, %s3651_s19   ;;  %p2653_p0 = scmp.ge.s32.totalorder %s3651_s19, 1  ;;  %s3651_s19 = sphi %s3718_s19, %s23_s19  }
   0x4   : > { %p349_p1 = scmp.lt.s32.totalorder %s3651_s19, 3 }
   0x6   : > { %p350_p2 = pnand %p2653_p0, %p349_p1 }
   0x7   : > { %s2654_s21 = sshll.u32 (!%p350_p2), %s3724_s20, 4  ;;  %p398_p4 = scmp.lt.s32.totalorder (!%p350_p2), %s3724_s20, 1 }
   0x8   : > { %353 = sbr.rel (%p350_p2) target bundleno = 1243 (0x4db), region = 64  ;;  %p393_p3 = scmp.lt.s32.totalorder (!%p350_p2), %s2654_s21, 31 }
   0xd   : > { %v3653_v1 = vmov 0   ;;  %s5523_s21 = smov (!%p393_p3, %s2654_s21), 31  ;;  %v3467_v8 = vld [vmem:[%s5379_s2 + $0x38] sm:$0xff]  ;;  %v3466_v12 = vld [vmem:[%s5379_s2 + $0x30] sm:$0xff]  ;;  %v3465_v18 = vld [vmem:[%s5379_s2 + $0x28] sm:$0xff]  ;;  %v406_v51 = vlaneseq  ;;  %s5525_s20 = smov (!%p398_p4, %s3724_s20), 1 }
   0xe   : > { %3639 = vset.pattern.permute.xlu1 %v3653_v1  ;;  %3638 = vset.pattern.permute.xlu0 %v3653_v1  ;;  %s2655_s10 = sshll.u32 %s5523_s21, 3  ;;  %v3475_v9 = vld [vmem:[%s5379_s2 + $0x78] sm:$0xff]  ;;  %v3474_v13 = vld [vmem:[%s5379_s2 + $0x70] sm:$0xff]  ;;  %v3473_v20 = vld [vmem:[%s5379_s2 + $0x68] sm:$0xff]  ;;  %v3654_v61 = vmov 1.0|1.0  }
   0xf   : > { %3640 = vset.pattern.permute.xlu2 %v3653_v1  ;;  %s3732_s24 = scalar_lea.vmem %s5377_s0, %s2655_s10  ;;  %v3483_v10 = vld [vmem:[%s5379_s2 + $0xb8] sm:$0xff]  ;;  %1311 = vmatpush.bf16.msra.mxu0 %v3467_v8  ;;  %v3482_v14 = vld [vmem:[%s5379_s2 + $0xb0] sm:$0xff]  ;;  %v3481_v21 = vld [vmem:[%s5379_s2 + $0xa8] sm:$0xff]  ;;  %v3850_v54 = vand.u32 127, %v406_v51  ;;  %v5393_v8 = vmov 0  ;;  %s2656_s26 = sshll.u32 %s5525_s20, 3 }
  0x10   : > { %v417_v2 = vld [vmem:[%s3732_s24 + $0x10] sm:$0xff]  ;;  %v415_v3 = vld [vmem:[%s3732_s24] sm:$0xff]  ;;  %v418_v5 = vld [vmem:[%s3732_s24 + $0x18] sm:$0xff]  ;;  %1360 = vmatpush.bf16.msra.mxu1 %v3475_v9  ;;  %1409 = vmatpush.bf16.msra.mxu2 %v3483_v10  ;;  %v5395_v10 = vmov 0  ;;  %s401_s29 = scalar_lea.vmem %s5378_s1, %s2656_s26  ;;  %s405_s15 = scalar_lea.vmem %s5388_s11, %s2656_s26 }
  0x11   : > { %438 = vperm.xlu1 %3639, %v417_v2   ;;  %432 = vperm.xlu0 %3638, %v415_v3   ;;  %v419_v4 = vld [vmem:[%s3732_s24 + $0x20] sm:$0xff]  ;;  %v416_v6 = vld [vmem:[%s3732_s24 + $0x8] sm:$0xff]  ;;  %v3491_v11 = vld [vmem:[%s5379_s2 + $0xf8] sm:$0xff]  ;;  %v3855_v56 = vadd.s32 128, %v3850_v54  ;;  %v3858_v57 = vadd.s32 256, %v3850_v54  ;;  %v3863_v60 = vadd.s32 384, %v3850_v54 }
  0x12   : > { %444 = vperm.xlu2 %3640, %v419_v4   ;;  %v420_v7 = vld [vmem:[%s3732_s24 + $0x28] sm:$0xff]  ;;  %1458 = vmatpush.bf16.msra.mxu3 %v3491_v11  ;;  %v422_v15 = vld [vmem:[%s3732_s24 + $0x38] sm:$0xff]  ;;  %v421_v16 = vld [vmem:[%s3732_s24 + $0x30] sm:$0xff]  ;;  %v3884_v1 = vadd.s32 512, %v3850_v54  ;;  %v3887_v2 = vadd.s32 640, %v3850_v54  ;;  %v3891_v3 = vadd.s32 768, %v3850_v54 }
  0x13   : > { %v3490_v17 = vld [vmem:[%s5379_s2 + $0xf0] sm:$0xff]  ;;  %1312 = vmatpush.bf16.msra.mxu0 %v3466_v12  ;;  %v423_v19 = vld [vmem:[%s3732_s24 + $0x40] sm:$0xff]  ;;  %v3489_v22 = vld [vmem:[%s5379_s2 + $0xe8] sm:$0xff]  ;;  %v3895_v4 = vadd.s32 896, %v3850_v54 }
  0x14   : > { %1361 = vmatpush.bf16.msra.mxu1 %v3474_v13  ;;  %1410 = vmatpush.bf16.msra.mxu2 %v3482_v14  ;;  %v3464_v23 = vld [vmem:[%s5379_s2 + $0x20] sm:$0xff]  ;;  %v425_v26 = vld [vmem:[%s3732_s24 + $0x50] sm:$0xff]  ;;  %v424_v27 = vld [vmem:[%s3732_s24 + $0x48] sm:$0xff]  ;;  %v5397_v14 = vmov 0 }
  0x15   : > { %v3472_v24 = vld [vmem:[%s5379_s2 + $0x60] sm:$0xff]  ;;  %v3463_v29 = vld [vmem:[%s5379_s2 + $0x18] sm:$0xff]  ;;  %v3462_v34 = vld [vmem:[%s5379_s2 + $0x10] sm:$0xff] }
  0x16   : > { %1459 = vmatpush.bf16.msra.mxu3 %v3490_v17  ;;  %v3480_v25 = vld [vmem:[%s5379_s2 + $0xa0] sm:$0xff]  ;;  %v426_v30 = vld [vmem:[%s3732_s24 + $0x58] sm:$0xff]  ;;  %v3470_v35 = vld [vmem:[%s5379_s2 + $0x50] sm:$0xff] }
  0x17   : > { %1313 = vmatpush.bf16.msra.mxu0 %v3465_v18  ;;  %v3488_v28 = vld [vmem:[%s5379_s2 + $0xe0] sm:$0xff]  ;;  %v3471_v31 = vld [vmem:[%s5379_s2 + $0x58] sm:$0xff]  ;;  %v3478_v36 = vld [vmem:[%s5379_s2 + $0x90] sm:$0xff]  ;;  %v5404_v18 = vmov 0 }
  0x18   : > { %1362 = vmatpush.bf16.msra.mxu1 %v3473_v20  ;;  %1411 = vmatpush.bf16.msra.mxu2 %v3481_v21  ;;  %v3479_v32 = vld [vmem:[%s5379_s2 + $0x98] sm:$0xff]  ;;  %v428_v37 = vld [vmem:[%s3732_s24 + $0x68] sm:$0xff]  ;;  %v427_v38 = vld [vmem:[%s3732_s24 + $0x60] sm:$0xff]  ;;  %v5409_v20 = vmov 0  ;;  %v5411_v21 = vmov 0 }
  0x19   : > { %441 = vperm.xlu1 %3639, %v418_v5   ;;  %435 = vperm.xlu0 %3638, %v416_v6   ;;  %v3487_v33 = vld [vmem:[%s5379_s2 + $0xd8] sm:$0xff]  ;;  %v3486_v39 = vld [vmem:[%s5379_s2 + $0xd0] sm:$0xff]  ;;  %v3461_v42 = vld [vmem:[%s5379_s2 + $0x8] sm:$0xff]  ;;  %v5389_v5 = vmov 0  ;;  %v5391_v6 = vmov 0 }
  0x1a   : > { %447 = vperm.xlu2 %3640, %v420_v7   ;;  %1460 = vmatpush.bf16.msra.mxu3 %v3489_v22  ;;  %v429_v40 = vld [vmem:[%s3732_s24 + $0x70] sm:$0xff]  ;;  %v430_v41 = vld [vmem:[%s3732_s24 + $0x78] sm:$0xff]  ;;  %v3469_v43 = vld [vmem:[%s5379_s2 + $0x48] sm:$0xff]  ;;  %v5413_v22 = vmov 0 }
  0x1b   : > { %1314 = vmatpush.bf16.msra.mxu0 %v3464_v23  ;;  %v3477_v44 = vld [vmem:[%s5379_s2 + $0x88] sm:$0xff]  ;;  %v3460_v46 = vld [vmem:[%s5379_s2] sm:$0xff]  ;;  %v5416_v23 = vmov 0  ;;  %v3498_v51 = vld [vmem:[%s5379_s2 + $0x130] sm:$0xff] }
  0x1c   : > { %1363 = vmatpush.bf16.msra.mxu1 %v3472_v24  ;;  %1412 = vmatpush.bf16.msra.mxu2 %v3480_v25  ;;  %v3485_v45 = vld [vmem:[%s5379_s2 + $0xc8] sm:$0xff]  ;;  %v3468_v47 = vld [vmem:[%s5379_s2 + $0x40] sm:$0xff]  ;;  %v5419_v24 = vmov 0 }
  0x1d   : > { %v3476_v48 = vld [vmem:[%s5379_s2 + $0x80] sm:$0xff] }
  0x1e   : > { %1461 = vmatpush.bf16.msra.mxu3 %v3488_v28  ;;  %v3484_v49 = vld [vmem:[%s5379_s2 + $0xc0] sm:$0xff]  ;;  %v3510_v28 = vld [vmem:[%s5379_s2 + $0x190] sm:$0xff] }
  0x1f   : > { %1315 = vmatpush.bf16.msra.mxu0 %v3463_v29 }
  0x20   : > { %1364 = vmatpush.bf16.msra.mxu1 %v3471_v31  ;;  %1413 = vmatpush.bf16.msra.mxu2 %v3479_v32  ;;  %v5439_v31 = vmov 0 }
  0x21   : > { %453 = vperm.xlu1 %3639, %v422_v15   ;;  %450 = vperm.xlu0 %3638, %v421_v16   ;;  %v5399_v15 = vmov 0  ;;  %v5401_v16 = vmov 0 }
  0x22   : > { %456 = vperm.xlu2 %3640, %v423_v19   ;;  %1462 = vmatpush.bf16.msra.mxu3 %v3487_v33  ;;  %v5406_v19 = vmov 0  ;;  %v5443_v33 = vmov 0 }
  0x23   : > { %1316 = vmatpush.bf16.msra.mxu0 %v3462_v34  ;;  %v5447_v34 = vmov 0 }
  0x24   : > { %1365 = vmatpush.bf16.msra.mxu1 %v3470_v35  ;;  %1414 = vmatpush.bf16.msra.mxu2 %v3478_v36  ;;  %v5451_v35 = vmov 0  ;;  %v5456_v36 = vmov 0 }
  0x26   : > { %1463 = vmatpush.bf16.msra.mxu3 %v3486_v39  ;;  %v5467_v39 = vmov 0 }
  0x27   : > { %1317 = vmatpush.bf16.msra.mxu0 %v3461_v42  ;;  %v5476_v42 = vmov 0 }
  0x28   : > { %1366 = vmatpush.bf16.msra.mxu1 %v3469_v43  ;;  %1415 = vmatpush.bf16.msra.mxu2 %v3477_v44  ;;  %v5480_v43 = vmov 0  ;;  %v5484_v44 = vmov 0 }
  0x29   : > { %462 = vperm.xlu1 %3639, %v425_v26   ;;  %459 = vperm.xlu0 %3638, %v424_v27   ;;  %v3502_v26 = vld [vmem:[%s5379_s2 + $0x150] sm:$0xff] }
  0x2a   : > { %465 = vperm.xlu2 %3640, %v426_v30   ;;  %1464 = vmatpush.bf16.msra.mxu3 %v3485_v45  ;;  %v5488_v45 = vmov 0 }
  0x2b   : > { %1318 = vmatpush.bf16.msra.mxu0 %v3460_v46  ;;  %v5492_v46 = vmov 0 }
  0x2c   : > { %1367 = vmatpush.bf16.msra.mxu1 %v3468_v47  ;;  %1416 = vmatpush.bf16.msra.mxu2 %v3476_v48  ;;  %v3499_v47 = vld [vmem:[%s5379_s2 + $0x138] sm:$0xff] }
  0x2d   : > { %v3507_v48 = vld [vmem:[%s5379_s2 + $0x178] sm:$0xff] }
  0x2e   : > { %1465 = vmatpush.bf16.msra.mxu3 %v3484_v49  ;;  %v3515_v49 = vld [vmem:[%s5379_s2 + $0x1b8] sm:$0xff] }
  0x2f   : > { %1507 = vmatpush.bf16.msrb.mxu0 %v3499_v47  ;;  %v3518_v47 = vld [vmem:[%s5379_s2 + $0x1d0] sm:$0xff] }
  0x30   : > { %1556 = vmatpush.bf16.msrb.mxu1 %v3507_v48  ;;  %1605 = vmatpush.bf16.msrb.mxu2 %v3515_v49  ;;  %v3493_v48 = vld [vmem:[%s5379_s2 + $0x108] sm:$0xff] }
  0x31   : > { %471 = vperm.xlu1 %3639, %v428_v37   ;;  %468 = vperm.xlu0 %3638, %v427_v38   ;;  %v5460_v37 = vmov 0  ;;  %v5464_v38 = vmov 0  ;;  %v3501_v49 = vld [vmem:[%s5379_s2 + $0x148] sm:$0xff] }
  0x32   : > { %474 = vperm.xlu2 %3640, %v429_v40   ;;  %v5470_v40 = vmov 0 }
  0x33   : > { %1508 = vmatpush.bf16.msrb.mxu0 %v3498_v51  ;;  %v3517_v51 = vld [vmem:[%s5379_s2 + $0x1c8] sm:$0xff] }
  0x39   : > { %477 = vperm.xlu0 %3638, %v430_v41   ;;  %v5473_v41 = vmov 0 }
  0x6c   : > { %v3846_v50 = vpop.permute.xlu2 %444 }
  0x74   : > { %v3852_v55 = vpop.permute.xlu2 %447 }
  0x7c   : > { %v3877_v62 = vpop.permute.xlu2 %456 }
  0x83   : > { %v3848_v52 = vpop.permute.xlu1 %438  ;;  %v433_v53 = vpop.permute.xlu0 %432 }
  0x84   : > { %vm479_vm0 = vcmp.eq.s32.totalorder %v433_v53, %v3850_v54  ;;  %vm480_vm5 = vcmp.eq.s32.totalorder %v433_v53, %v3855_v56  ;;  %vm481_vm8 = vcmp.eq.s32.totalorder %v433_v53, %v3858_v57  ;;  %vm482_vm10 = vcmp.eq.s32.totalorder %v433_v53, %v3863_v60  ;;  %v3925_v9 = vpop.permute.xlu2 %465 }
  0x85   : > { %vm483_vm14 = vcmp.eq.s32.totalorder %v433_v53, %v3884_v1 }
  0x8b   : > { %v3860_v58 = vpop.permute.xlu1 %441  ;;  %v436_v59 = vpop.permute.xlu0 %435 }
  0x8c   : > { %vm487_vm1 = vcmp.eq.s32.totalorder %v436_v59, %v3850_v54  ;;  %vm488_vm2 = vcmp.eq.s32.totalorder %v436_v59, %v3855_v56  ;;  %vm489_vm3 = vcmp.eq.s32.totalorder %v436_v59, %v3858_v57  ;;  %vm490_vm6 = vcmp.eq.s32.totalorder %v436_v59, %v3863_v60  ;;  %v3979_v13 = vpop.permute.xlu2 %474 }
  0x8d   : > { %vm2914_vm4 = vmpackc.low %vm487_vm1, %vm479_vm0  ;;  %vm491_vm12 = vcmp.eq.s32.totalorder %v436_v59, %v3884_v1  ;;  %vm492_vm13 = vcmp.eq.s32.totalorder %v436_v59, %v3887_v2  ;;  %vm493_vm15 = vcmp.eq.s32.totalorder %v436_v59, %v3891_v3  ;;  %vm484_vm1 = vcmp.eq.s32.totalorder %v433_v53, %v3887_v2 }
  0x8e   : > { %2915 = vmatmul.msk.bf16.vlgmr.msra.gmra.mxu0 %vm2914_vm4, %v3654_v61  ;;  %vm2930_vm7 = vmpackc.low %vm488_vm2, %vm480_vm5  ;;  %vm494_vm2 = vcmp.eq.s32.totalorder %v436_v59, %v3895_v4  ;;  %vm503_vm4 = vcmp.eq.s32.totalorder %v3860_v58, %v3850_v54  ;;  %v3505_v59 = vld [vmem:[%s5379_s2 + $0x168] sm:$0xff] }
  0x8f   : > { %2931 = vmatmul.msk.bf16.vlgmr.msra.gmra.mxu1 %vm2930_vm7, %v3654_v61  ;;  %vm2946_vm9 = vmpackc.low %vm489_vm3, %vm481_vm8  ;;  %vm495_vm3 = vcmp.eq.s32.totalorder %v3848_v52, %v3850_v54  ;;  %vm496_vm7 = vcmp.eq.s32.totalorder %v3848_v52, %v3855_v56  ;;  %vm504_vm8 = vcmp.eq.s32.totalorder %v3860_v58, %v3855_v56 }
  0x90   : > { %2947 = vmatmul.msk.bf16.vlgmr.msra.gmra.mxu2 %vm2946_vm9, %v3654_v61  ;;  %vm2962_vm11 = vmpackc.low %vm490_vm6, %vm482_vm10  ;;  %vm485_vm6 = vcmp.eq.s32.totalorder %v433_v53, %v3891_v3  ;;  %vm486_vm10 = vcmp.eq.s32.totalorder %v433_v53, %v3895_v4  ;;  %v3514_v53 = vld [vmem:[%s5379_s2 + $0x1b0] sm:$0xff] }
  0x91   : > { %2963 = vmatmul.msk.bf16.vlgmr.msra.gmra.mxu3 %vm2962_vm11, %v3654_v61  ;;  %vm3899_vm0 = vmpackc.low %vm491_vm12, %vm483_vm14  ;;  %vm497_vm11 = vcmp.eq.s32.totalorder %v3848_v52, %v3858_v57  ;;  %vm505_vm12 = vcmp.eq.s32.totalorder %v3860_v58, %v3858_v57  ;;  %1606 = vmatpush.bf16.msrb.mxu2 %v3514_v53  ;;  %v3500_v53 = vld [vmem:[%s5379_s2 + $0x140] sm:$0xff] }
  0x92   : > { %v5390_v5 = vsel %vm3899_vm0, 4294967295, %v5389_v5  ;;  %vm3909_vm5 = vmpackc.low %vm492_vm13, %vm484_vm1  ;;  %vm506_vm1 = vcmp.eq.s32.totalorder %v3860_v58, %v3863_v60 }
  0x93   : > { %v3879_v63 = vpop.permute.xlu0 %450  ;;  %v3881_v0 = vpop.permute.xlu1 %453  ;;  %v5392_v6 = vsel %vm3909_vm5, 4294967295, %v5391_v6  ;;  %vm3920_vm9 = vmpackc.low %vm493_vm15, %vm485_vm6  ;;  %vm498_vm15 = vcmp.eq.s32.totalorder %v3848_v52, %v3863_v60  ;;  %vm523_vm5 = vcmp.eq.s32.totalorder %v3852_v55, %v3884_v1 }
  0x94   : > { %v5394_v8 = vsel %vm3920_vm9, 4294967295, %v5393_v8  ;;  %vm3931_vm13 = vmpackc.low %vm494_vm2, %vm486_vm10  ;;  %vm511_vm10 = vcmp.eq.s32.totalorder %v3846_v50, %v3850_v54  ;;  %vm512_vm2 = vcmp.eq.s32.totalorder %v3846_v50, %v3855_v56  ;;  %vm5422_vm0 = vcmp.eq.s32.totalorder %v3881_v0, %v3855_v56 }
  0x95   : > { %v5396_v10 = vsel %vm3931_vm13, 4294967295, %v5395_v10  ;;  %vm2916_vm14 = vmpackc.low %vm503_vm4, %vm495_vm3 }
  0x96   : > { %vm2932_vm6 = vmpackc.low %vm504_vm8, %vm496_vm7  ;;  %vm509_vm8 = vcmp.eq.s32.totalorder %v3860_v58, %v3891_v3  ;;  %vm520_vm7 = vcmp.eq.s32.totalorder %v3852_v55, %v3855_v56 }
  0x97   : > { %vm2948_vm9 = vmpackc.low %vm505_vm12, %vm497_vm11  ;;  %vm501_vm12 = vcmp.eq.s32.totalorder %v3848_v52, %v3891_v3 }
  0x98   : > { %vm2964_vm13 = vmpackc.low %vm506_vm1, %vm498_vm15  ;;  %vm499_vm15 = vcmp.eq.s32.totalorder %v3848_v52, %v3884_v1  ;;  %vm507_vm1 = vcmp.eq.s32.totalorder %v3860_v58, %v3884_v1 }
  0x99   : > { %vm4005_vm3 = vmpackc.low %vm507_vm1, %vm499_vm15  ;;  %vm519_vm15 = vcmp.eq.s32.totalorder %v3852_v55, %v3850_v54 }
  0x9a   : > { %v5398_v14 = vsel %vm4005_vm3, 4294967295, %v5397_v14  ;;  %vm4038_vm11 = vmpackc.low %vm509_vm8, %vm501_vm12  ;;  %vm514_vm12 = vcmp.eq.s32.totalorder %v3846_v50, %v3863_v60  ;;  %vm515_vm3 = vcmp.eq.s32.totalorder %v3846_v50, %v3884_v1 }
  0x9b   : > { %v3914_v7 = vpop.permute.xlu0 %459  ;;  %v3939_v11 = vpop.permute.xlu1 %462  ;;  %v5402_v16 = vsel %vm4038_vm11, 4294967295, %v5401_v16  ;;  %vm2918_vm8 = vmpackc.low %vm519_vm15, %vm511_vm10  ;;  %vm522_vm11 = vcmp.eq.s32.totalorder %v3852_v55, %v3863_v60  ;;  %vm5415_vm15 = vcmp.eq.s32.totalorder %v3879_v63, %v3850_v54 }
  0x9c   : > { %vm2966_vm10 = vmpackc.low %vm522_vm11, %vm514_vm12  ;;  %vm526_vm11 = vcmp.eq.s32.totalorder %v3852_v55, %v3895_v4 }
  0x9e   : > { %2917 = vmatmul.msk.bf16.gmra.mxu0 %vm2916_vm14, %v3654_v61  ;;  %vm502_vm14 = vcmp.eq.s32.totalorder %v3848_v52, %v3895_v4 }
  0x9f   : > { %2933 = vmatmul.msk.bf16.gmra.mxu1 %vm2932_vm6, %v3654_v61  ;;  %vm500_vm6 = vcmp.eq.s32.totalorder %v3848_v52, %v3887_v2  ;;  %v3506_v52 = vld [vmem:[%s5379_s2 + $0x170] sm:$0xff] }
  0xa0   : > { %2949 = vmatmul.msk.bf16.gmra.mxu2 %vm2948_vm9, %v3654_v61  ;;  %vm5403_vm9 = vcmp.eq.s32.totalorder %v3860_v58, %v3895_v4  ;;  %1557 = vmatpush.bf16.msrb.mxu1 %v3506_v52  ;;  %v3492_v52 = vld [vmem:[%s5379_s2 + $0x100] sm:$0xff] }
  0xa1   : > { %2965 = vmatmul.msk.bf16.gmra.mxu3 %vm2964_vm13, %v3654_v61  ;;  %vm508_vm13 = vcmp.eq.s32.totalorder %v3860_v58, %v3887_v2  ;;  %vm4054_vm4 = vmpackc.low %vm5403_vm9, %vm502_vm14  ;;  %vm516_vm14 = vcmp.eq.s32.totalorder %v3846_v50, %v3887_v2  ;;  %v3497_v58 = vld [vmem:[%s5379_s2 + $0x128] sm:$0xff] }
  0xa2   : > { %vm4027_vm1 = vmpackc.low %vm508_vm13, %vm500_vm6  ;;  %vm513_vm6 = vcmp.eq.s32.totalorder %v3846_v50, %v3858_v57  ;;  %vm521_vm13 = vcmp.eq.s32.totalorder %v3852_v55, %v3858_v57  ;;  %v5405_v18 = vsel %vm4054_vm4, 4294967295, %v5404_v18  ;;  %vm534_vm4 = vcmp.eq.s32.totalorder %v3879_v63, %v3895_v4  ;;  %1509 = vmatpush.bf16.msrb.mxu0 %v3497_v58 }
  0xa3   : > { %v3977_v12 = vpop.permute.xlu0 %468  ;;  %v5400_v15 = vsel %vm4027_vm1, 4294967295, %v5399_v15  ;;  %vm2934_vm1 = vmpackc.low %vm520_vm7, %vm512_vm2  ;;  %vm539_vm7 = vcmp.eq.s32.totalorder %v3881_v0, %v3884_v1  ;;  %v4210_v32 = vpop.permute.xlu1 %471 }
  0xa4   : > { %vm2950_vm9 = vmpackc.low %vm521_vm13, %vm513_vm6  ;;  %vm525_vm6 = vcmp.eq.s32.totalorder %v3852_v55, %v3891_v3  ;;  %1558 = vmatpush.bf16.msrb.mxu1 %v3505_v59 }
  0xa5   : > { %vm4092_vm13 = vmpackc.low %vm523_vm5, %vm515_vm3  ;;  %vm5408_vm5 = vcmp.eq.s32.totalorder %v3852_v55, %v3887_v2  ;;  %v3522_v55 = vld [vmem:[%s5379_s2 + $0x1f0] sm:$0xff] }
  0xa6   : > { %v5407_v19 = vsel %vm4092_vm13, 4294967295, %v5406_v19  ;;  %vm4110_vm3 = vmpackc.low %vm5408_vm5, %vm516_vm14  ;;  %vm532_vm14 = vcmp.eq.s32.totalorder %v3879_v63, %v3887_v2  ;;  %vm540_vm5 = vcmp.eq.s32.totalorder %v3881_v0, %v3887_v2  ;;  %vm530_vm13 = vcmp.eq.s32.totalorder %v3879_v63, %v3863_v60 }
  0xa7   : > { %v5410_v20 = vsel %vm4110_vm3, 4294967295, %v5409_v20  ;;  %vm537_vm3 = vcmp.eq.s32.totalorder %v3881_v0, %v3858_v57 }
  0xab   : > { %v4042_v17 = vpop.permute.xlu0 %477 }
  0xae   : > { %2919 = vmatmul.msk.bf16.gmra.mxu0 %vm2918_vm8, %v3654_v61  ;;  %vm535_vm8 = vcmp.eq.s32.totalorder %v3881_v0, %v3850_v54 }
  0xaf   : > { %2935 = vmatmul.msk.bf16.gmra.mxu1 %vm2934_vm1, %v3654_v61  ;;  %vm517_vm1 = vcmp.eq.s32.totalorder %v3846_v50, %v3891_v3 }
  0xb0   : > { %2951 = vmatmul.msk.bf16.gmra.mxu2 %vm2950_vm9, %v3654_v61  ;;  %vm518_vm9 = vcmp.eq.s32.totalorder %v3846_v50, %v3895_v4  ;;  %vm4122_vm12 = vmpackc.low %vm525_vm6, %vm517_vm1  ;;  %vm533_vm1 = vcmp.eq.s32.totalorder %v3879_v63, %v3891_v3  ;;  %vm541_vm6 = vcmp.eq.s32.totalorder %v3881_v0, %v3891_v3  ;;  %v3523_v50 = vld [vmem:[%s5379_s2 + $0x1f8] sm:$0xff] }
  0xb1   : > { %2967 = vmatmul.msk.bf16.gmra.mxu3 %vm2966_vm10, %v3654_v61  ;;  %v5412_v21 = vsel %vm4122_vm12, 4294967295, %v5411_v21  ;;  %vm529_vm10 = vcmp.eq.s32.totalorder %v3879_v63, %v3858_v57  ;;  %vm4134_vm2 = vmpackc.low %vm526_vm11, %vm518_vm9  ;;  %vm538_vm9 = vcmp.eq.s32.totalorder %v3881_v0, %v3863_v60  ;;  %vm5418_vm11 = vcmp.eq.s32.totalorder %v3879_v63, %v3884_v1 }
  0xb2   : > { %v5414_v22 = vsel %vm4134_vm2, 4294967295, %v5413_v22  ;;  %vm4145_vm12 = vmpackc.low %vm535_vm8, %vm5415_vm15  ;;  %vm542_vm15 = vcmp.eq.s32.totalorder %v3881_v0, %v3895_v4  ;;  %vm5421_vm8 = vcmp.eq.s32.totalorder %v3879_v63, %v3855_v56  ;;  %1654 = vmatpush.bf16.msrb.mxu3 %v3523_v50  ;;  %v3521_v63 = vld [vmem:[%s5379_s2 + $0x1e8] sm:$0xff]  ;;  %v3496_v0 = vld [vmem:[%s5379_s2 + $0x120] sm:$0xff] }
  0xb3   : > { %v5417_v23 = vsel %vm4145_vm12, 4294967295, %v5416_v23  ;;  %vm4156_vm2 = vmpackc.low %vm539_vm7, %vm5418_vm11  ;;  %1510 = vmatpush.bf16.msrb.mxu0 %v3496_v0  ;;  %v3509_v50 = vld [vmem:[%s5379_s2 + $0x188] sm:$0xff] }
  0xb4   : > { %v5420_v24 = vsel %vm4156_vm2, 4294967295, %v5419_v24  ;;  %vm2936_vm12 = vmpackc.low %vm5422_vm0, %vm5421_vm8 }
  0xb5   : > { %vm4170_vm7 = vmpackc.low %vm540_vm5, %vm532_vm14  ;;  %vm5433_vm14 = vcmp.eq.s32.totalorder %v3877_v62, %v3884_v1  ;;  %vm5438_vm5 = vcmp.eq.s32.totalorder %v3914_v7, %v3887_v2 }
  0xb6   : > { %vm4174_vm11 = vmpackc.low %vm537_vm3, %vm529_vm10  ;;  %vm5434_vm3 = vcmp.eq.s32.totalorder %v3914_v7, %v3884_v1  ;;  %1655 = vmatpush.bf16.msrb.mxu3 %v3522_v55  ;;  %v3508_v55 = vld [vmem:[%s5379_s2 + $0x180] sm:$0xff] }
  0xb7   : > { %vm4178_vm2 = vmpackc.low %vm541_vm6, %vm533_vm1  ;;  %vm5441_vm1 = vcmp.eq.s32.totalorder %v3877_v62, %v3891_v3  ;;  %vm5442_vm6 = vcmp.eq.s32.totalorder %v3914_v7, %v3891_v3 }
  0xb8   : > { %vm4182_vm0 = vmpackc.low %vm538_vm9, %vm530_vm13  ;;  %vm5437_vm13 = vcmp.eq.s32.totalorder %v3877_v62, %v3887_v2 }
  0xb9   : > { %vm4186_vm8 = vmpackc.low %vm542_vm15, %vm534_vm4  ;;  %vm5445_vm15 = vcmp.eq.s32.totalorder %v3877_v62, %v3895_v4 }
  0xba   : > { %vm4196_vm10 = vmpackc.low %vm5434_vm3, %vm5433_vm14  ;;  %vm5446_vm14 = vcmp.eq.s32.totalorder %v3914_v7, %v3895_v4  ;;  %1656 = vmatpush.bf16.msrb.mxu3 %v3521_v63 }
  0xbb   : > { %vm4206_vm4 = vmpackc.low %vm5438_vm5, %vm5437_vm13  ;;  %vm5449_vm13 = vcmp.eq.s32.totalorder %v3939_v11, %v3884_v1  ;;  %vm5450_vm5 = vcmp.eq.s32.totalorder %v3925_v9, %v3884_v1 }
  0xbc   : > { %v5440_v31 = vsel %vm4206_vm4, 4294967295, %v5439_v31  ;;  %vm4218_vm9 = vmpackc.low %vm5442_vm6, %vm5441_vm1  ;;  %vm5453_vm6 = vnez %v5417_v23  ;;  %v3494_v23 = vld [vmem:[%s5379_s2 + $0x110] sm:$0xff] }
  0xbd   : > { %v5444_v33 = vsel %vm4218_vm9, 4294967295, %v5443_v33  ;;  %vm4228_vm3 = vmpackc.low %vm5446_vm14, %vm5445_vm15  ;;  %vm5454_vm15 = vcmp.eq.s32.totalorder %v3939_v11, %v3887_v2  ;;  %vm5455_vm14 = vcmp.eq.s32.totalorder %v3925_v9, %v3887_v2 }
  0xbe   : > { %v5448_v34 = vsel %vm4228_vm3, 4294967295, %v5447_v34  ;;  %vm4238_vm1 = vmpackc.low %vm5450_vm5, %vm5449_vm13  ;;  %2921 = vmatmul.msk.bf16.gmra.mxu0 %vm5453_vm6, %v3654_v61  ;;  %vm587_vm13 = vcmp.eq.s32.totalorder %v4210_v32, %v3884_v1  ;;  %vm5458_vm5 = vcmp.eq.s32.totalorder %v3939_v11, %v3891_v3  ;;  %vm5459_vm6 = vcmp.eq.s32.totalorder %v3925_v9, %v3891_v3 }
  0xbf   : > { %v5452_v35 = vsel %vm4238_vm1, 4294967295, %v5451_v35  ;;  %vm4251_vm3 = vmpackc.low %vm5455_vm14, %vm5454_vm15  ;;  %2937 = vmatmul.msk.bf16.gmra.mxu1 %vm2936_vm12, %v3654_v61  ;;  %vm588_vm15 = vcmp.eq.s32.totalorder %v4210_v32, %v3887_v2  ;;  %vm5462_vm12 = vcmp.eq.s32.totalorder %v3939_v11, %v3895_v4  ;;  %vm5463_vm14 = vcmp.eq.s32.totalorder %v3925_v9, %v3895_v4 }
  0xc0   : > { %v5457_v36 = vsel %vm4251_vm3, 4294967295, %v5456_v36  ;;  %vm4264_vm1 = vmpackc.low %vm5459_vm6, %vm5458_vm5  ;;  %2953 = vmatmul.msk.bf16.gmra.mxu2 %vm4174_vm11, %v3654_v61  ;;  %vm589_vm5 = vcmp.eq.s32.totalorder %v4210_v32, %v3891_v3  ;;  %vm5466_vm11 = vcmp.eq.s32.totalorder %v3977_v12, %v3884_v1 }
  0xc1   : > { %v5461_v37 = vsel %vm4264_vm1, 4294967295, %v5460_v37  ;;  %vm4279_vm3 = vmpackc.low %vm5463_vm14, %vm5462_vm12  ;;  %2969 = vmatmul.msk.bf16.gmra.mxu3 %vm4182_vm0, %v3654_v61  ;;  %vm590_vm12 = vcmp.eq.s32.totalorder %v4210_v32, %v3895_v4  ;;  %vm5469_vm14 = vcmp.eq.s32.totalorder %v3977_v12, %v3887_v2  ;;  %vm5472_vm0 = vcmp.eq.s32.totalorder %v3977_v12, %v3891_v3 }
  0xc2   : > { %v5465_v38 = vsel %vm4279_vm3, 4294967295, %v5464_v38  ;;  %vm4291_vm6 = vmpackc.low %vm587_vm13, %vm5466_vm11  ;;  %vm5475_vm13 = vcmp.eq.s32.totalorder %v3977_v12, %v3895_v4 }
  0xc3   : > { %v5468_v39 = vsel %vm4291_vm6, 4294967295, %v5467_v39  ;;  %vm4300_vm3 = vmpackc.low %vm588_vm15, %vm5469_vm14  ;;  %vm5478_vm15 = vcmp.eq.s32.totalorder %v3979_v13, %v3884_v1  ;;  %vm5479_vm14 = vcmp.eq.s32.totalorder %v4042_v17, %v3884_v1  ;;  %v3504_v1 = vld [vmem:[%s5379_s2 + $0x160] sm:$0xff] }
  0xc4   : > { %v5471_v40 = vsel %vm4300_vm3, 4294967295, %v5470_v40  ;;  %vm4307_vm1 = vmpackc.low %vm589_vm5, %vm5472_vm0  ;;  %vm5482_vm5 = vcmp.eq.s32.totalorder %v3979_v13, %v3887_v2  ;;  %vm5483_vm0 = vcmp.eq.s32.totalorder %v4042_v17, %v3887_v2  ;;  %v3512_v2 = vld [vmem:[%s5379_s2 + $0x1a0] sm:$0xff]  ;;  %1559 = vmatpush.bf16.msrb.mxu1 %v3504_v1 }
  0xc5   : > { %v5474_v41 = vsel %vm4307_vm1, 4294967295, %v5473_v41  ;;  %vm4314_vm11 = vmpackc.low %vm590_vm12, %vm5475_vm13  ;;  %vm5486_vm13 = vcmp.eq.s32.totalorder %v3979_v13, %v3891_v3  ;;  %vm554_vm1 = vcmp.eq.s32.totalorder %v3914_v7, %v3863_v60 }
  0xc6   : > { %v5477_v42 = vsel %vm4314_vm11, 4294967295, %v5476_v42  ;;  %vm4324_vm3 = vmpackc.low %vm5479_vm14, %vm5478_vm15  ;;  %vm5487_vm11 = vcmp.eq.s32.totalorder %v4042_v17, %v3891_v3  ;;  %vm5490_vm14 = vcmp.eq.s32.totalorder %v3979_v13, %v3895_v4  ;;  %v3520_v3 = vld [vmem:[%s5379_s2 + $0x1e0] sm:$0xff] }
  0xc7   : > { %v5481_v43 = vsel %vm4324_vm3, 4294967295, %v5480_v43  ;;  %vm4334_vm12 = vmpackc.low %vm5483_vm0, %vm5482_vm5  ;;  %vm5491_vm3 = vcmp.eq.s32.totalorder %v4042_v17, %v3895_v4  ;;  %vm543_vm0 = vcmp.eq.s32.totalorder %v3877_v62, %v3850_v54  ;;  %v3495_v4 = vld [vmem:[%s5379_s2 + $0x118] sm:$0xff]  ;;  %1657 = vmatpush.bf16.msrb.mxu3 %v3520_v3 }
  0xc8   : > { %v5485_v44 = vsel %vm4334_vm12, 4294967295, %v5484_v44  ;;  %vm4344_vm15 = vmpackc.low %vm5487_vm11, %vm5486_vm13  ;;  %vm551_vm12 = vcmp.eq.s32.totalorder %v3914_v7, %v3850_v54  ;;  %vm544_vm11 = vcmp.eq.s32.totalorder %v3877_v62, %v3855_v56  ;;  %vm552_vm13 = vcmp.eq.s32.totalorder %v3914_v7, %v3855_v56  ;;  %1511 = vmatpush.bf16.msrb.mxu0 %v3495_v4 }
  0xc9   : > { %v5489_v45 = vsel %vm4344_vm15, 4294967295, %v5488_v45  ;;  %vm4354_vm5 = vmpackc.low %vm5491_vm3, %vm5490_vm14  ;;  %vm545_vm15 = vcmp.eq.s32.totalorder %v3877_v62, %v3858_v57  ;;  %vm553_vm3 = vcmp.eq.s32.totalorder %v3914_v7, %v3858_v57  ;;  %v3503_v7 = vld [vmem:[%s5379_s2 + $0x158] sm:$0xff] }
  0xca   : > { %v5493_v46 = vsel %vm4354_vm5, 4294967295, %v5492_v46  ;;  %vm2922_vm14 = vmpackc.low %vm551_vm12, %vm543_vm0  ;;  %vm546_vm5 = vcmp.eq.s32.totalorder %v3877_v62, %v3863_v60  ;;  %v3513_v62 = vld [vmem:[%s5379_s2 + $0x1a8] sm:$0xff]  ;;  %vm561_vm12 = vcmp.eq.s32.totalorder %v3939_v11, %v3858_v57  ;;  %vm562_vm0 = vcmp.eq.s32.totalorder %v3939_v11, %v3863_v60  ;;  %1560 = vmatpush.bf16.msrb.mxu1 %v3503_v7 }
  0xcb   : > { %vm2938_vm6 = vmpackc.low %vm552_vm13, %vm544_vm11  ;;  %1607 = vmatpush.bf16.msrb.mxu2 %v3513_v62  ;;  %vm570_vm11 = vcmp.eq.s32.totalorder %v3925_v9, %v3863_v60 }
  0xcc   : > { %vm2954_vm9 = vmpackc.low %vm553_vm3, %vm545_vm15  ;;  %vm569_vm15 = vcmp.eq.s32.totalorder %v3925_v9, %v3858_v57  ;;  %1512 = vmatpush.bf16.msrb.mxu0 %v3494_v23 }
  0xcd   : > { %vm2970_vm4 = vmpackc.low %vm554_vm1, %vm546_vm5  ;;  %vm560_vm1 = vcmp.eq.s32.totalorder %v3939_v11, %v3855_v56 }
  0xce   : > { %2923 = vmatmul.msk.bf16.gmra.mxu0 %vm2922_vm14, %v3654_v61  ;;  %vm2956_vm3 = vmpackc.low %vm569_vm15, %vm561_vm12  ;;  %1561 = vmatpush.bf16.msrb.mxu1 %v3502_v26  ;;  %vm577_vm15 = vcmp.eq.s32.totalorder %v3977_v12, %v3858_v57 }
  0xcf   : > { %2939 = vmatmul.msk.bf16.gmra.mxu1 %vm2938_vm6, %v3654_v61  ;;  %vm568_vm6 = vcmp.eq.s32.totalorder %v3925_v9, %v3855_v56  ;;  %vm2972_vm14 = vmpackc.low %vm570_vm11, %vm562_vm0  ;;  %1608 = vmatpush.bf16.msrb.mxu2 %v3512_v2  ;;  %vm578_vm0 = vcmp.eq.s32.totalorder %v3977_v12, %v3863_v60  ;;  %vm586_vm11 = vcmp.eq.s32.totalorder %v4210_v32, %v3863_v60 }
  0xd0   : > { %2955 = vmatmul.msk.bf16.gmra.mxu2 %vm2954_vm9, %v3654_v61  ;;  %vm567_vm9 = vcmp.eq.s32.totalorder %v3925_v9, %v3850_v54  ;;  %vm2940_vm13 = vmpackc.low %vm568_vm6, %vm560_vm1  ;;  %v3511_v9 = vld [vmem:[%s5379_s2 + $0x198] sm:$0xff]  ;;  %vm576_vm1 = vcmp.eq.s32.totalorder %v3977_v12, %v3855_v56  ;;  %vm584_vm6 = vcmp.eq.s32.totalorder %v4210_v32, %v3855_v56  ;;  %1513 = vmatpush.bf16.msrb.mxu0 %v3493_v48 }
  0xd1   : > { %2971 = vmatmul.msk.bf16.gmra.mxu3 %vm2970_vm4, %v3654_v61  ;;  %vm559_vm4 = vcmp.eq.s32.totalorder %v3939_v11, %v3850_v54  ;;  %v3519_v11 = vld [vmem:[%s5379_s2 + $0x1d8] sm:$0xff] }
  0xd2   : > { %vm2924_vm5 = vmpackc.low %vm567_vm9, %vm559_vm4  ;;  %1658 = vmatpush.bf16.msrb.mxu3 %v3519_v11  ;;  %vm575_vm4 = vcmp.eq.s32.totalorder %v3977_v12, %v3850_v54  ;;  %vm583_vm9 = vcmp.eq.s32.totalorder %v4210_v32, %v3850_v54  ;;  %1562 = vmatpush.bf16.msrb.mxu1 %v3501_v49  ;;  %v3516_v12 = vld [vmem:[%s5379_s2 + $0x1c0] sm:$0xff] }
  0xd3   : > { %1609 = vmatpush.bf16.msrb.mxu2 %v3511_v9  ;;  %vm2926_vm12 = vmpackc.low %vm583_vm9, %vm575_vm4  ;;  %vm599_vm4 = vcmp.eq.s32.totalorder %v4042_v17, %v3850_v54  ;;  %vm600_vm9 = vcmp.eq.s32.totalorder %v4042_v17, %v3855_v56 }
  0xd4   : > { %1514 = vmatpush.bf16.msrb.mxu0 %v3492_v52 }
  0xd6   : > { %1659 = vmatpush.bf16.msrb.mxu3 %v3518_v47  ;;  %1563 = vmatpush.bf16.msrb.mxu1 %v3500_v53 }
  0xd7   : > { %1610 = vmatpush.bf16.msrb.mxu2 %v3510_v28 }
  0xda   : > { %1660 = vmatpush.bf16.msrb.mxu3 %v3517_v51 }
  0xdb   : > { %1611 = vmatpush.bf16.msrb.mxu2 %v3509_v50 }
  0xde   : > { %2925 = vmatmul.msk.bf16.gmra.mxu0 %vm2924_vm5, %v3654_v61  ;;  %vm585_vm5 = vcmp.eq.s32.totalorder %v4210_v32, %v3858_v57  ;;  %1661 = vmatpush.bf16.msrb.mxu3 %v3516_v12 }
  0xdf   : > { %2941 = vmatmul.msk.bf16.gmra.mxu1 %vm2940_vm13, %v3654_v61  ;;  %vm2942_vm13 = vmpackc.low %vm584_vm6, %vm576_vm1  ;;  %1612 = vmatpush.bf16.msrb.mxu2 %v3508_v55  ;;  %vm591_vm1 = vcmp.eq.s32.totalorder %v3979_v13, %v3850_v54  ;;  %vm601_vm6 = vcmp.eq.s32.totalorder %v4042_v17, %v3858_v57 }
  0xe0   : > { %2957 = vmatmul.msk.bf16.gmra.mxu2 %vm2956_vm3, %v3654_v61  ;;  %vm2958_vm3 = vmpackc.low %vm585_vm5, %vm577_vm15  ;;  %vm592_vm15 = vcmp.eq.s32.totalorder %v3979_v13, %v3855_v56  ;;  %vm602_vm5 = vcmp.eq.s32.totalorder %v4042_v17, %v3863_v60 }
  0xe1   : > { %2973 = vmatmul.msk.bf16.gmra.mxu3 %vm2972_vm14, %v3654_v61  ;;  %vm2974_vm14 = vmpackc.low %vm586_vm11, %vm578_vm0  ;;  %vm593_vm11 = vcmp.eq.s32.totalorder %v3979_v13, %v3858_v57 }
  0xe2   : > { %vm2944_vm0 = vmpackc.low %vm600_vm9, %vm592_vm15  ;;  %vm5495_vm9 = vnez %v5392_v6  ;;  %vm5499_vm15 = vnez %v5400_v15 }
  0xee   : > { %2927 = vmatmul.msk.bf16.gmra.mxu0 %vm2926_vm12, %v3654_v61  ;;  %vm2928_vm12 = vmpackc.low %vm599_vm4, %vm591_vm1  ;;  %vm5494_vm4 = vnez %v5390_v5  ;;  %vm5496_vm1 = vnez %v5394_v8 }
  0xef   : > { %2943 = vmatmul.msk.bf16.gmra.mxu1 %vm2942_vm13, %v3654_v61  ;;  %vm2960_vm13 = vmpackc.low %vm601_vm6, %vm593_vm11  ;;  %vm5497_vm6 = vnez %v5396_v10  ;;  %vm5502_vm11 = vnez %v5407_v19 }
  0xf0   : > { %2959 = vmatmul.msk.bf16.gmra.mxu2 %vm2958_vm3, %v3654_v61  ;;  %vm594_vm3 = vcmp.eq.s32.totalorder %v3979_v13, %v3863_v60 }
  0xf1   : > { %2975 = vmatmul.msk.bf16.gmra.mxu3 %vm2974_vm14, %v3654_v61  ;;  %vm2976_vm14 = vmpackc.low %vm602_vm5, %vm594_vm3  ;;  %vm5500_vm5 = vnez %v5402_v16  ;;  %vm5504_vm3 = vnez %v5412_v21 }
  0xfe   : > { %2929 = vmatmul.msk.bf16.gmra.mxu0 %vm2928_vm12, %v3654_v61  ;;  %vm5498_vm12 = vnez %v5398_v14 }
  0xff   : > { %2945 = vmatmul.msk.bf16.gmra.mxu1 %vm2944_vm0, %v3654_v61  ;;  %vm5501_vm0 = vnez %v5405_v18 }
 0x100   : > { %2961 = vmatmul.msk.bf16.gmra.mxu2 %vm2960_vm13, %v3654_v61  ;;  %vm5503_vm13 = vnez %v5410_v20 }
 0x101   : > { %2977 = vmatmul.msk.bf16.gmra.mxu3 %vm2976_vm14, %v3654_v61  ;;  %vm5505_vm14 = vnez %v5414_v22 }
 0x10b   : > { %v1320_v54 = vpop.f32.mrf.mxu0 }
 0x10c   : > { %v1369_v56 = vpop.f32.mrf.mxu1 }
 0x10d   : > { %v1370_v17 = vadd.f32 %v1369_v56, %v1320_v54 }
 0x10e   : > { %2979 = vmatmul.msk.bf16.vlgmr.msrb.gmra.mxu0 %vm5494_vm4, %v3654_v61  ;;  %vm5506_vm4 = vnez %v5420_v24 }
 0x10f   : > { %2995 = vmatmul.msk.bf16.vlgmr.msrb.gmra.mxu1 %vm5495_vm9, %v3654_v61  ;;  %vm5511_vm9 = vnez %v5457_v36 }
 0x110   : > { %3011 = vmatmul.msk.bf16.vlgmr.msrb.gmra.mxu2 %vm5496_vm1, %v3654_v61  ;;  %vm5512_vm1 = vnez %v5461_v37 }
 0x111   : > { %3027 = vmatmul.msk.bf16.vlgmr.msrb.gmra.mxu3 %vm5497_vm6, %v3654_v61  ;;  %vm5513_vm6 = vnez %v5465_v38 }
 0x113   : > { %v1418_v57 = vpop.f32.mrf.mxu2  ;;  %v1322_v60 = vpop.f32.mrf.mxu0 }
 0x114   : > { %v1419_v13 = vadd.f32 %v1418_v57, %v1370_v17  ;;  %v1467_v32 = vpop.f32.mrf.mxu3  ;;  %v1371_v58 = vpop.f32.mrf.mxu1 }
 0x115   : > { %v1372_v59 = vadd.f32 %v1371_v58, %v1322_v60 }
 0x116   : > { %v4549_v5 = vadd.f32 %v1467_v32, %v1419_v13 }
 0x11b   : > { %v1420_v62 = vpop.f32.mrf.mxu2  ;;  %v1325_v63 = vpop.f32.mrf.mxu0 }
 0x11c   : > { %v1421_v6 = vadd.f32 %v1420_v62, %v1372_v59  ;;  %v1469_v0 = vpop.f32.mrf.mxu3  ;;  %v1374_v1 = vpop.f32.mrf.mxu1 }
 0x11d   : > { %v1375_v2 = vadd.f32 %v1374_v1, %v1325_v63 }
 0x11e   : > { %v4551_v8 = vadd.f32 %v1469_v0, %v1421_v6  ;;  %2981 = vmatmul.msk.bf16.gmra.mxu0 %vm5498_vm12, %v3654_v61  ;;  %vm5514_vm12 = vnez %v5468_v39 }
 0x11f   : > { %2997 = vmatmul.msk.bf16.gmra.mxu1 %vm5499_vm15, %v3654_v61  ;;  %vm5515_vm15 = vnez %v5471_v40 }
 0x120   : > { %3013 = vmatmul.msk.bf16.gmra.mxu2 %vm5500_vm5, %v3654_v61  ;;  %vm5516_vm5 = vnez %v5474_v41 }
 0x121   : > { %3029 = vmatmul.msk.bf16.gmra.mxu3 %vm5501_vm0, %v3654_v61  ;;  %vm5517_vm0 = vnez %v5477_v42 }
 0x123   : > { %v1423_v10 = vpop.f32.mrf.mxu2  ;;  %v1327_v3 = vpop.f32.mrf.mxu0 }
 0x124   : > { %v1424_v4 = vadd.f32 %v1423_v10, %v1375_v2  ;;  %v1472_v7 = vpop.f32.mrf.mxu3  ;;  %v1376_v9 = vpop.f32.mrf.mxu1 }
 0x125   : > { %v1377_v11 = vadd.f32 %v1376_v9, %v1327_v3 }
 0x126   : > { %v4565_v14 = vadd.f32 %v1472_v7, %v1424_v4 }
 0x12b   : > { %v1425_v23 = vpop.f32.mrf.mxu2  ;;  %v1330_v26 = vpop.f32.mrf.mxu0 }
 0x12c   : > { %v1426_v15 = vadd.f32 %v1425_v23, %v1377_v11  ;;  %v1474_v28 = vpop.f32.mrf.mxu3  ;;  %v1379_v47 = vpop.f32.mrf.mxu1 }
 0x12d   : > { %v1380_v48 = vadd.f32 %v1379_v47, %v1330_v26 }
 0x12e   : > { %v4567_v16 = vadd.f32 %v1474_v28, %v1426_v15  ;;  %2983 = vmatmul.msk.bf16.gmra.mxu0 %vm5502_vm11, %v3654_v61  ;;  %vm5518_vm11 = vnez %v5481_v43 }
 0x12f   : > { %2999 = vmatmul.msk.bf16.gmra.mxu1 %vm5503_vm13, %v3654_v61  ;;  %vm5519_vm13 = vnez %v5485_v44 }
 0x130   : > { %3015 = vmatmul.msk.bf16.gmra.mxu2 %vm5504_vm3, %v3654_v61  ;;  %vm5520_vm3 = vnez %v5489_v45 }
 0x131   : > { %3031 = vmatmul.msk.bf16.gmra.mxu3 %vm5505_vm14, %v3654_v61  ;;  %vm5521_vm14 = vnez %v5493_v46 }
 0x133   : > { %v1428_v18 = vpop.f32.mrf.mxu2  ;;  %v1332_v49 = vpop.f32.mrf.mxu0 }
 0x134   : > { %v1429_v50 = vadd.f32 %v1428_v18, %v1380_v48  ;;  %v1477_v51 = vpop.f32.mrf.mxu3  ;;  %v1381_v52 = vpop.f32.mrf.mxu1 }
 0x135   : > { %v1382_v53 = vadd.f32 %v1381_v52, %v1332_v49 }
 0x136   : > { %v4581_v19 = vadd.f32 %v1477_v51, %v1429_v50 }
 0x13b   : > { %v1430_v55 = vpop.f32.mrf.mxu2  ;;  %v1335_v12 = vpop.f32.mrf.mxu0 }
 0x13c   : > { %v1431_v20 = vadd.f32 %v1430_v55, %v1382_v53  ;;  %v1479_v54 = vpop.f32.mrf.mxu3  ;;  %v1384_v56 = vpop.f32.mrf.mxu1 }
 0x13d   : > { %v1385_v17 = vadd.f32 %v1384_v56, %v1335_v12 }
 0x13e   : > { %v4583_v21 = vadd.f32 %v1479_v54, %v1431_v20  ;;  %2985 = vmatmul.msk.bf16.gmra.mxu0 %vm5506_vm4, %v3654_v61  ;;  %vm2582_vm4 = vcmask 7168  }
 0x13f   : > { %3001 = vmatmul.msk.bf16.gmra.mxu1 %vm4170_vm7, %v3654_v61  ;;  %vm5508_vm7 = vnez %v5444_v33 }
 0x140   : > { %3017 = vmatmul.msk.bf16.gmra.mxu2 %vm4178_vm2, %v3654_v61  ;;  %vm5507_vm2 = vnez %v5440_v31 }
 0x141   : > { %3033 = vmatmul.msk.bf16.gmra.mxu3 %vm4186_vm8, %v3654_v61  ;;  %vm5509_vm8 = vnez %v5448_v34 }
 0x143   : > { %v1433_v22 = vpop.f32.mrf.mxu2  ;;  %v1337_v57 = vpop.f32.mrf.mxu0 }
 0x144   : > { %v1434_v60 = vadd.f32 %v1433_v22, %v1385_v17  ;;  %v1482_v13 = vpop.f32.mrf.mxu3  ;;  %v1386_v32 = vpop.f32.mrf.mxu1 }
 0x145   : > { %v1387_v58 = vadd.f32 %v1386_v32, %v1337_v57 }
 0x146   : > { %v4597_v24 = vadd.f32 %v1482_v13, %v1434_v60 }
 0x14b   : > { %v1435_v59 = vpop.f32.mrf.mxu2  ;;  %v1340_v62 = vpop.f32.mrf.mxu0 }
 0x14c   : > { %v1436_v25 = vadd.f32 %v1435_v59, %v1387_v58  ;;  %v1484_v63 = vpop.f32.mrf.mxu3  ;;  %v1389_v6 = vpop.f32.mrf.mxu1 }
 0x14d   : > { %v1390_v27 = vadd.f32 %v1389_v6, %v1340_v62 }
 0x14e   : > { %v4599_v0 = vadd.f32 %v1484_v63, %v1436_v25  ;;  %2987 = vmatmul.msk.bf16.gmra.mxu0 %vm4196_vm10, %v3654_v61  ;;  %vm5510_vm10 = vnez %v5452_v35 }
 0x14f   : > { %3003 = vmatmul.msk.bf16.gmra.mxu1 %vm5507_vm2, %v3654_v61 }
 0x150   : > { %3019 = vmatmul.msk.bf16.gmra.mxu2 %vm5508_vm7, %v3654_v61 }
 0x151   : > { %3035 = vmatmul.msk.bf16.gmra.mxu3 %vm5509_vm8, %v3654_v61 }
 0x153   : > { %v1438_v29 = vpop.f32.mrf.mxu2  ;;  %v4613_v1 = vpop.f32.mrf.mxu0 }
 0x154   : > { %v1439_v2 = vadd.f32 %v1438_v29, %v1390_v27  ;;  %v1487_v10 = vpop.f32.mrf.mxu3  ;;  %v4615_v30 = vpop.f32.mrf.mxu1 }
 0x156   : > { %v4617_v3 = vadd.f32 %v1487_v10, %v1439_v2 }
 0x15b   : > { %v4619_v31 = vpop.f32.mrf.mxu2  ;;  %v1345_v4 = vpop.f32.mrf.mxu0 }
 0x15c   : > { %v4621_v7 = vpop.f32.mrf.mxu3  ;;  %v1394_v33 = vpop.f32.mrf.mxu1 }
 0x15d   : > { %v1395_v34 = vadd.f32 %v1394_v33, %v1345_v4 }
 0x15e   : > { %2989 = vmatmul.msk.bf16.gmra.mxu0 %vm5510_vm10, %v3654_v61 }
 0x15f   : > { %3005 = vmatmul.msk.bf16.gmra.mxu1 %vm5511_vm9, %v3654_v61 }
 0x160   : > { %3021 = vmatmul.msk.bf16.gmra.mxu2 %vm5512_vm1, %v3654_v61 }
 0x161   : > { %3037 = vmatmul.msk.bf16.gmra.mxu3 %vm5513_vm6, %v3654_v61 }
 0x163   : > { %v1443_v9 = vpop.f32.mrf.mxu2  ;;  %v4635_v11 = vpop.f32.mrf.mxu0 }
 0x164   : > { %v1444_v23 = vadd.f32 %v1443_v9, %v1395_v34  ;;  %v1492_v26 = vpop.f32.mrf.mxu3  ;;  %v4637_v35 = vpop.f32.mrf.mxu1 }
 0x166   : > { %v4639_v15 = vadd.f32 %v1492_v26, %v1444_v23 }
 0x16b   : > { %v4641_v36 = vpop.f32.mrf.mxu2  ;;  %v1350_v28 = vpop.f32.mrf.mxu0 }
 0x16c   : > { %v4643_v47 = vpop.f32.mrf.mxu3  ;;  %v1399_v37 = vpop.f32.mrf.mxu1 }
 0x16d   : > { %v1400_v38 = vadd.f32 %v1399_v37, %v1350_v28 }
 0x16e   : > { %2991 = vmatmul.msk.bf16.gmra.mxu0 %vm5514_vm12, %v3654_v61 }
 0x16f   : > { %3007 = vmatmul.msk.bf16.gmra.mxu1 %vm5515_vm15, %v3654_v61 }
 0x170   : > { %3023 = vmatmul.msk.bf16.gmra.mxu2 %vm5516_vm5, %v3654_v61 }
 0x171   : > { %3039 = vmatmul.msk.bf16.gmra.mxu3 %vm5517_vm0, %v3654_v61 }
 0x173   : > { %v1448_v48 = vpop.f32.mrf.mxu2  ;;  %v4657_v18 = vpop.f32.mrf.mxu0 }
 0x174   : > { %v1449_v49 = vadd.f32 %v1448_v48, %v1400_v38  ;;  %v1497_v50 = vpop.f32.mrf.mxu3  ;;  %v4659_v39 = vpop.f32.mrf.mxu1 }
 0x176   : > { %v4661_v51 = vadd.f32 %v1497_v50, %v1449_v49 }
 0x17b   : > { %v4663_v40 = vpop.f32.mrf.mxu2  ;;  %v1355_v52 = vpop.f32.mrf.mxu0 }
 0x17c   : > { %v4665_v53 = vpop.f32.mrf.mxu3  ;;  %v1404_v41 = vpop.f32.mrf.mxu1 }
 0x17d   : > { %v1405_v42 = vadd.f32 %v1404_v41, %v1355_v52 }
 0x17e   : > { %2993 = vmatmul.msk.bf16.gmra.mxu0 %vm5518_vm11, %v3654_v61 }
 0x17f   : > { %3009 = vmatmul.msk.bf16.gmra.mxu1 %vm5519_vm13, %v3654_v61 }
 0x180   : > { %3025 = vmatmul.msk.bf16.gmra.mxu2 %vm5520_vm3, %v3654_v61 }
 0x181   : > { %3041 = vmatmul.msk.bf16.gmra.mxu3 %vm5521_vm14, %v3654_v61 }
 0x183   : > { %v1453_v55 = vpop.f32.mrf.mxu2  ;;  %v1357_v12 = vpop.f32.mrf.mxu0 }
 0x184   : > { %v1454_v20 = vadd.f32 %v1453_v55, %v1405_v42  ;;  %v1502_v54 = vpop.f32.mrf.mxu3  ;;  %v1406_v56 = vpop.f32.mrf.mxu1 }
 0x185   : > { %v1407_v17 = vadd.f32 %v1406_v56, %v1357_v12 }
 0x186   : > { %v4679_v43 = vadd.f32 %v1502_v54, %v1454_v20 }
 0x18b   : > { %v1455_v22 = vpop.f32.mrf.mxu2  ;;  %v1516_v44 = vpop.f32.mrf.mxu0 }
 0x18c   : > { %v1456_v57 = vadd.f32 %v1455_v22, %v1407_v17  ;;  %v1504_v60 = vpop.f32.mrf.mxu3  ;;  %v1517_v45 = vadd.f32 %v1516_v44, %v4549_v5  ;;  %v1565_v13 = vpop.f32.mrf.mxu1 }
 0x18e   : > { %v4682_v32 = vadd.f32 %v1504_v60, %v1456_v57  ;;  %v1566_v46 = vadd.f32 %v1565_v13, %v1517_v45 }
 0x193   : > { %v1614_v61 = vpop.f32.mrf.mxu2  ;;  %v1518_v58 = vpop.f32.mrf.mxu0 }
 0x194   : > { %v1615_v59 = vadd.f32 %v1614_v61, %v1566_v46  ;;  %v1663_v62 = vpop.f32.mrf.mxu3  ;;  %v1519_v25 = vadd.f32 %v1518_v58, %v4551_v8  ;;  %v1567_v63 = vpop.f32.mrf.mxu1 }
 0x196   : > { %v4685_v6 = vadd.f32 %v1663_v62, %v1615_v59  ;;  %v1568_v27 = vadd.f32 %v1567_v63, %v1519_v25 }
 0x19b   : > { %v1616_v29 = vpop.f32.mrf.mxu2  ;;  %v1521_v2 = vpop.f32.mrf.mxu0 }
 0x19c   : > { %v1617_v10 = vadd.f32 %v1616_v29, %v1568_v27  ;;  %v1665_v4 = vpop.f32.mrf.mxu3  ;;  %v1522_v5 = vadd.f32 %v1521_v2, %v4565_v14  ;;  %v1570_v33 = vpop.f32.mrf.mxu1 }
 0x19e   : > { %v4688_v34 = vadd.f32 %v1665_v4, %v1617_v10  ;;  %v1571_v9 = vadd.f32 %v1570_v33, %v1522_v5 }
 0x1a3   : > { %v1619_v23 = vpop.f32.mrf.mxu2  ;;  %v1523_v26 = vpop.f32.mrf.mxu0 }
 0x1a4   : > { %v1620_v28 = vadd.f32 %v1619_v23, %v1571_v9  ;;  %v1668_v37 = vpop.f32.mrf.mxu3  ;;  %v1524_v8 = vadd.f32 %v1523_v26, %v4567_v16  ;;  %v1572_v38 = vpop.f32.mrf.mxu1 }
 0x1a6   : > { %v4691_v48 = vadd.f32 %v1668_v37, %v1620_v28  ;;  %v1573_v49 = vadd.f32 %v1572_v38, %v1524_v8 }
 0x1ab   : > { %v1621_v50 = vpop.f32.mrf.mxu2  ;;  %v1526_v52 = vpop.f32.mrf.mxu0 }
 0x1ac   : > { %v1622_v41 = vadd.f32 %v1621_v50, %v1573_v49  ;;  %v1670_v42 = vpop.f32.mrf.mxu3  ;;  %v1527_v14 = vadd.f32 %v1526_v52, %v4581_v19  ;;  %v1575_v55 = vpop.f32.mrf.mxu1 }
 0x1ae   : > { %v4694_v12 = vadd.f32 %v1670_v42, %v1622_v41  ;;  %v1576_v20 = vadd.f32 %v1575_v55, %v1527_v14 }
 0x1b3   : > { %v1624_v54 = vpop.f32.mrf.mxu2  ;;  %v1528_v56 = vpop.f32.mrf.mxu0 }
 0x1b4   : > { %v1625_v17 = vadd.f32 %v1624_v54, %v1576_v20  ;;  %v1673_v22 = vpop.f32.mrf.mxu3  ;;  %v1529_v16 = vadd.f32 %v1528_v56, %v4583_v21  ;;  %v1577_v44 = vpop.f32.mrf.mxu1 }
 0x1b6   : > { %v4697_v57 = vadd.f32 %v1673_v22, %v1625_v17  ;;  %v1578_v60 = vadd.f32 %v1577_v44, %v1529_v16 }
 0x1bb   : > { %v1626_v45 = vpop.f32.mrf.mxu2  ;;  %v1531_v13 = vpop.f32.mrf.mxu0 }
 0x1bc   : > { %v1627_v46 = vadd.f32 %v1626_v45, %v1578_v60  ;;  %v1675_v61 = vpop.f32.mrf.mxu3  ;;  %v1532_v19 = vadd.f32 %v1531_v13, %v4597_v24  ;;  %v1580_v58 = vpop.f32.mrf.mxu1 }
 0x1be   : > { %v4700_v59 = vadd.f32 %v1675_v61, %v1627_v46  ;;  %v1581_v62 = vadd.f32 %v1580_v58, %v1532_v19 }
 0x1c3   : > { %v1629_v25 = vpop.f32.mrf.mxu2  ;;  %v1533_v63 = vpop.f32.mrf.mxu0 }
 0x1c4   : > { %v1630_v27 = vadd.f32 %v1629_v25, %v1581_v62  ;;  %v1678_v29 = vpop.f32.mrf.mxu3  ;;  %v1534_v21 = vadd.f32 %v1533_v63, %v4599_v0  ;;  %v1582_v2 = vpop.f32.mrf.mxu1  ;;  %v1402_v25 = vadd.f32 %v4659_v39, %v4657_v18 }
 0x1c6   : > { %v4703_v10 = vadd.f32 %v1678_v29, %v1630_v27  ;;  %v1583_v4 = vadd.f32 %v1582_v2, %v1534_v21  ;;  %v1451_v63 = vadd.f32 %v4663_v40, %v1402_v25  ;;  %v1397_v21 = vadd.f32 %v4637_v35, %v4635_v11  ;;  %v3156_v25 = vld [vmem:[%s5382_s5 + $0xa0] sm:$0xf] }
 0x1cb   : > { %v1631_v5 = vpop.f32.mrf.mxu2  ;;  %v1536_v33 = vpop.f32.mrf.mxu0 }
 0x1cc   : > { %v1632_v9 = vadd.f32 %v1631_v5, %v1583_v4  ;;  %v1680_v23 = vpop.f32.mrf.mxu3  ;;  %v1537_v24 = vadd.f32 %v1536_v33, %v4617_v3  ;;  %v1585_v26 = vpop.f32.mrf.mxu1  ;;  %v1446_v4 = vadd.f32 %v4641_v36, %v1397_v21  ;;  %v1500_v5 = vadd.f32 %v4665_v53, %v1451_v63  ;;  %v3554_v63 = vld [vmem:[%s5382_s5 + $0xac] sm:$0xf0]  ;;  %v3140_v21 = vld [vmem:[%s5382_s5 + $0x80] sm:$0xf] }
 0x1ce   : > { %v4706_v28 = vadd.f32 %v1680_v23, %v1632_v9  ;;  %v1586_v37 = vadd.f32 %v1585_v26, %v1537_v24  ;;  %v1392_v23 = vadd.f32 %v4615_v30, %v4613_v1  ;;  %v1495_v24 = vadd.f32 %v4643_v47, %v1446_v4  ;;  %v3531_v47 = vld [vmem:[%s5380_s3 + $0x38] sm:$0xff]  ;;  %v3196_v4 = vld [vmem:[%s5382_s5 + $0xe8] sm:$0xf] }
 0x1cf   : > { %1793 = vmatpush.bf16.msra.mxu1 %v3531_v47  ;;  %v3546_v47 = vld [vmem:[%s5382_s5 + $0x6c] sm:$0xf0] }
 0x1d0   : > { %v1441_v39 = vadd.f32 %v4619_v31, %v1392_v23  ;;  %v3198_v23 = vld [vmem:[%s5382_s5 + $0xf8] sm:$0xf0] }
 0x1d3   : > { %v1634_v8 = vpop.f32.mrf.mxu2  ;;  %v1538_v38 = vpop.f32.mrf.mxu0 }
 0x1d4   : > { %v1635_v49 = vadd.f32 %v1634_v8, %v1586_v37  ;;  %v1683_v50 = vpop.f32.mrf.mxu3  ;;  %v4708_v52 = vpop.f32.mrf.mxu1 }
 0x1d6   : > { %v4710_v0 = vadd.f32 %v1683_v50, %v1635_v49 }
 0x1db   : > { %v4712_v41 = vpop.f32.mrf.mxu2  ;;  %v1541_v42 = vpop.f32.mrf.mxu0 }
 0x1dc   : > { %v4714_v14 = vpop.f32.mrf.mxu3  ;;  %v1590_v55 = vpop.f32.mrf.mxu1  ;;  %v1542_v1 = vadd.f32 %v1541_v42, %v4639_v15 }
 0x1e3   : > { %v1639_v20 = vpop.f32.mrf.mxu2  ;;  %v1543_v3 = vpop.f32.mrf.mxu0 }
 0x1e4   : > { %v4716_v54 = vpop.f32.mrf.mxu3  ;;  %v1592_v56 = vpop.f32.mrf.mxu1  ;;  %v1544_v37 = vadd.f32 %v1543_v3, %v1495_v24  ;;  %v1591_v3 = vadd.f32 %v1590_v55, %v1542_v1  ;;  %v3180_v24 = vld [vmem:[%s5382_s5 + $0xc8] sm:$0xf]  ;;  %v3553_v1 = vld [vmem:[%s5382_s5 + $0xac] sm:$0xf] }
 0x1eb   : > { %v1641_v17 = vpop.f32.mrf.mxu2  ;;  %v1546_v22 = vpop.f32.mrf.mxu0 }
 0x1ec   : > { %v1690_v16 = vpop.f32.mrf.mxu3  ;;  %v1595_v44 = vpop.f32.mrf.mxu1  ;;  %v1547_v11 = vadd.f32 %v1546_v22, %v4661_v51  ;;  %v1593_v22 = vadd.f32 %v1592_v56, %v1544_v37  ;;  %v3182_v37 = vld [vmem:[%s5382_s5 + $0xd8] sm:$0xf0] }
 0x1ee   : > { %v1596_v30 = vadd.f32 %v1595_v44, %v1547_v11  ;;  %v1640_v44 = vadd.f32 %v1639_v20, %v1591_v3  ;;  %v3559_v11 = vld [vmem:[%s5382_s5 + $0xd4] sm:$0xf0] }
 0x1f0   : > { %v1689_v55 = vadd.f32 %v4716_v54, %v1640_v44  ;;  %v3526_v54 = vld [vmem:[%s5380_s3 + $0x10] sm:$0xff] }
 0x1f3   : > { %v1644_v60 = vpop.f32.mrf.mxu2  ;;  %v1548_v45 = vpop.f32.mrf.mxu0 }
 0x1f4   : > { %v1693_v13 = vpop.f32.mrf.mxu3  ;;  %v1597_v46 = vpop.f32.mrf.mxu1  ;;  %v1549_v18 = vadd.f32 %v1548_v45, %v1500_v5  ;;  %v1645_v45 = vadd.f32 %v1644_v60, %v1596_v30  ;;  %v3157_v5 = vor.u32 %v3554_v63, %v3156_v25  ;;  %v3166_v30 = vld [vmem:[%s5382_s5 + $0xb8] sm:$0xf0]  ;;  %v3532_v25 = vld [vmem:[%s5382_s5 + $0x4] sm:$0xf]  ;;  %v3078_v63 = vld [vmem:[%s5382_s5 + $0x10] sm:$0xf0] }
 0x1f6   : > { %v1598_v53 = vadd.f32 %v1597_v46, %v1549_v18  ;;  %v1642_v46 = vadd.f32 %v1641_v17, %v1593_v22  ;;  %v3126_v22 = vld [vmem:[%s5382_s5 + $0x70] sm:$0xf0] }
 0x1f8   : > { %v1691_v60 = vadd.f32 %v1690_v16, %v1642_v46  ;;  %v3556_v16 = vld [vmem:[%s5382_s5 + $0xc4] sm:$0xf]  ;;  %v3108_v46 = vld [vmem:[%s5382_s5 + $0x40] sm:$0xf] }
 0x1fb   : > { %v1646_v61 = vpop.f32.mrf.mxu2  ;;  %v1551_v19 = vpop.f32.mrf.mxu0 }
 0x1fc   : > { %v1695_v58 = vpop.f32.mrf.mxu3  ;;  %v1600_v62 = vpop.f32.mrf.mxu1  ;;  %v1552_v33 = vadd.f32 %v1551_v19, %v4679_v43  ;;  %v1647_v50 = vadd.f32 %v1646_v61, %v1598_v53  ;;  %v1694_v61 = vadd.f32 %v1693_v13, %v1645_v45  ;;  %v3174_v13 = vld [vmem:[%s5382_s5 + $0xd0] sm:$0xf0]  ;;  %v3181_v53 = vor.u32 %v3559_v11, %v3180_v24  ;;  %v3260_v24 = vld [vmem:[%s5384_s7 + $0x70] sm:$0xf]  ;;  %v3579_v11 = vld [vmem:[%s5384_s7 + $0x74] sm:$0xf0] }
 0x1fe   : > { %v1601_v35 = vadd.f32 %v1600_v62, %v1552_v33  ;;  %v1696_v15 = vadd.f32 %v1695_v58, %v1647_v50  ;;  %v3177_v62 = vor.u32 %v3556_v16, %v3174_v13  ;;  %v3563_v33 = vld [vmem:[%s5382_s5 + $0xf4] sm:$0xf0]  ;;  %v3134_v16 = vld [vmem:[%s5382_s5 + $0x78] sm:$0xf0]  ;;  %v3076_v13 = vld [vmem:[%s5382_s5] sm:$0xf] }
 0x203   : > { %v1649_v27 = vpop.f32.mrf.mxu2  ;;  %v1553_v29 = vpop.f32.mrf.mxu0 }
 0x204   : > { %v1698_v2 = vpop.f32.mrf.mxu3  ;;  %v1554_v9 = vadd.f32 %v1553_v29, %v4682_v32  ;;  %v1602_v40 = vpop.f32.mrf.mxu1  ;;  %v1650_v8 = vadd.f32 %v1649_v27, %v1601_v35  ;;  %v1490_v32 = vadd.f32 %v4621_v7, %v1441_v39  ;;  %v3530_v7 = vld [vmem:[%s5380_s3 + $0x30] sm:$0xff]  ;;  %v3552_v27 = vld [vmem:[%s5382_s5 + $0xa4] sm:$0xf]  ;;  %v3197_v39 = vor.u32 %v3563_v33, %v3196_v4  ;;  %v3557_v35 = vld [vmem:[%s5382_s5 + $0xcc] sm:$0xf] }
 0x205   : > { %1794 = vmatpush.bf16.msra.mxu1 %v3530_v7  ;;  %v3158_v29 = vld [vmem:[%s5382_s5 + $0xb0] sm:$0xf0]  ;;  %v3081_v4 = vor.u32 %v3532_v25, %v3078_v63  ;;  %v3228_v25 = vld [vmem:[%s5384_s7 + $0x30] sm:$0xf] }
 0x206   : > { %v1603_v26 = vadd.f32 %v1602_v40, %v1554_v9  ;;  %v1539_v51 = vadd.f32 %v1538_v38, %v1490_v32  ;;  %v1699_v19 = vadd.f32 %v1698_v2, %v1650_v8  ;;  %v3529_v38 = vld [vmem:[%s5380_s3 + $0x28] sm:$0xff]  ;;  %v3550_v2 = vld [vmem:[%s5382_s5 + $0x8c] sm:$0xf0]  ;;  %v3161_v18 = vor.u32 %v3552_v27, %v3158_v29 }
 0x207   : > { %v3561_v9 = vld [vmem:[%s5382_s5 + $0xec] sm:$0xf]  ;;  %v3185_v8 = vor.u32 %v3557_v35, %v3182_v37  ;;  %v3141_v32 = vor.u32 %v3550_v2, %v3140_v21  ;;  %v3116_v29 = vld [vmem:[%s5382_s5 + $0x48] sm:$0xf]  ;;  %v3543_v21 = vld [vmem:[%s5382_s5 + $0x54] sm:$0xf0] }
 0x208   : > { %v1588_v42 = vadd.f32 %v4708_v52, %v1539_v51  ;;  %v3528_v52 = vld [vmem:[%s5380_s3 + $0x20] sm:$0xff]  ;;  %v3201_v40 = vor.u32 %v3561_v9, %v3198_v23  ;;  %v3541_v2 = vld [vmem:[%s5382_s5 + $0x4c] sm:$0xf]  ;;  %v3117_v33 = vor.u32 %v3543_v21, %v3116_v29  ;;  %v3100_v23 = vld [vmem:[%s5382_s5 + $0x28] sm:$0xf] }
 0x209   : > { %1795 = vmatpush.bf16.msra.mxu1 %v3529_v38  ;;  %v3544_v51 = vld [vmem:[%s5382_s5 + $0x64] sm:$0xf]  ;;  %v3324_v35 = vld [vmem:[%s5384_s7 + $0xf0] sm:$0xf]  ;;  %v3595_v37 = vld [vmem:[%s5384_s7 + $0xf4] sm:$0xf0] }
 0x20a   : > { %v1637_v56 = vadd.f32 %v4712_v41, %v1588_v42  ;;  %v3527_v41 = vld [vmem:[%s5380_s3 + $0x18] sm:$0xff]  ;;  %v3129_v3 = vor.u32 %v3544_v51, %v3126_v22  ;;  %v3540_v38 = vld [vmem:[%s5382_s5 + $0x44] sm:$0xf]  ;;  %v3316_v51 = vld [vmem:[%s5384_s7 + $0xe0] sm:$0xf] }
 0x20b   : > { %v1651_v36 = vpop.f32.mrf.mxu2  ;;  %v3593_v22 = vld [vmem:[%s5384_s7 + $0xe4] sm:$0xf0]  ;;  %v3292_v29 = vld [vmem:[%s5384_s7 + $0xb0] sm:$0xf]  ;;  %v3587_v21 = vld [vmem:[%s5384_s7 + $0xb4] sm:$0xf0] }
 0x20c   : > { %v1652_v43 = vadd.f32 %v1651_v36, %v1603_v26  ;;  %v1700_v49 = vpop.f32.mrf.mxu3  ;;  %v1686_v20 = vadd.f32 %v4714_v14, %v1637_v56  ;;  %v3558_v14 = vld [vmem:[%s5382_s5 + $0xcc] sm:$0xf0]  ;;  %v3548_v26 = vld [vmem:[%s5382_s5 + $0x84] sm:$0xf]  ;;  %v3142_v36 = vld [vmem:[%s5382_s5 + $0x90] sm:$0xf0] }
 0x20d   : > { %1796 = vmatpush.bf16.msra.mxu1 %v3528_v52  ;;  %v3145_v50 = vor.u32 %v3548_v26, %v3142_v36  ;;  %v3110_v56 = vld [vmem:[%s5382_s5 + $0x50] sm:$0xf0]  ;;  %v3551_v52 = vld [vmem:[%s5382_s5 + $0x94] sm:$0xf0]  ;;  %v3084_v26 = vld [vmem:[%s5382_s5 + $0x8] sm:$0xf]  ;;  %v3261_v36 = vor.u32 %v3579_v11, %v3260_v24 }
 0x20e   : > { %v1701_v31 = vadd.f32 %v1700_v49, %v1652_v43  ;;  %v3164_v43 = vld [vmem:[%s5382_s5 + $0xa8] sm:$0xf]  ;;  %v3555_v49 = vld [vmem:[%s5382_s5 + $0xb4] sm:$0xf0] }
 0x20f   : > { %v3165_v45 = vor.u32 %v3555_v49, %v3164_v43  ;;  %v3535_v49 = vld [vmem:[%s5382_s5 + $0x14] sm:$0xf0]  ;;  %v3569_v24 = vld [vmem:[%s5384_s7 + $0x24] sm:$0xf0] }
 0x210   : > { %1704 = vmatpush.msra.mxu0 %v1701_v31  ;;  %v3124_v31 = vld [vmem:[%s5382_s5 + $0x60] sm:$0xf] }
 0x211   : > { %1797 = vmatpush.bf16.msra.mxu1 %v3527_v41  ;;  %v3125_v7 = vor.u32 %v3546_v47, %v3124_v31  ;;  %v3150_v41 = vld [vmem:[%s5382_s5 + $0x98] sm:$0xf0]  ;;  %v3388_v47 = vld [vmem:[%s5384_s7 + $0x170] sm:$0xf] }
 0x212   : > { %1705 = vmatpush.msra.mxu0 %v1699_v19  ;;  %v3169_v19 = vor.u32 %v3553_v1, %v3166_v30  ;;  %v3533_v1 = vld [vmem:[%s5382_s5 + $0xc] sm:$0xf]  ;;  %v3086_v30 = vld [vmem:[%s5382_s5 + $0x18] sm:$0xf0] }
 0x214   : > { %1706 = vmatpush.msra.mxu0 %v1696_v15  ;;  %v3542_v15 = vld [vmem:[%s5382_s5 + $0x4c] sm:$0xf0] }
 0x215   : > { %1798 = vmatpush.bf16.msra.mxu1 %v3526_v54  ;;  %v3109_v42 = vor.u32 %v3542_v15, %v3108_v46  ;;  %v3244_v46 = vld [vmem:[%s5384_s7 + $0x50] sm:$0xf]  ;;  %v3575_v15 = vld [vmem:[%s5384_s7 + $0x54] sm:$0xf0] }
 0x216   : > { %1707 = vmatpush.msra.mxu0 %v1694_v61 }
 0x218   : > { %1708 = vmatpush.msra.mxu0 %v1691_v60  ;;  %v3148_v60 = vld [vmem:[%s5382_s5 + $0x88] sm:$0xf] }
 0x219   : > { %v3149_v54 = vor.u32 %v3551_v52, %v3148_v60  ;;  %v3380_v52 = vld [vmem:[%s5384_s7 + $0x160] sm:$0xf] }
 0x21a   : > { %1709 = vmatpush.msra.mxu0 %v1689_v55  ;;  %v3113_v55 = vor.u32 %v3540_v38, %v3110_v56  ;;  %v3591_v38 = vld [vmem:[%s5384_s7 + $0xd4] sm:$0xf0]  ;;  %v3641_v56 = vld [vmem:[%s5381_s4] ss:$0 sm:$0xff] }
 0x21c   : > { %1710 = vmatpush.msra.mxu0 %v1686_v20  ;;  %v3549_v20 = vld [vmem:[%s5382_s5 + $0x8c] sm:$0xf] }
 0x21e   : > { %1711 = vmatpush.msra.mxu0 %v4710_v0  ;;  %v3525_v0 = vld [vmem:[%s5380_s3 + $0x8] sm:$0xff] }
 0x21f   : > { %1799 = vmatpush.bf16.msra.mxu1 %v3525_v0  ;;  %v3153_v0 = vor.u32 %v3549_v20, %v3150_v41  ;;  %v3609_v20 = vld [vmem:[%s5384_s7 + $0x164] sm:$0xf0]  ;;  %v3245_v41 = vor.u32 %v3575_v15, %v3244_v46  ;;  %v3412_v46 = vld [vmem:[%s5384_s7 + $0x1a0] sm:$0xf] }
 0x220   : > { %1712 = vmatpush.msra.mxu0 %v4706_v28  ;;  %v3172_v28 = vld [vmem:[%s5382_s5 + $0xc0] sm:$0xf]  ;;  %v3617_v15 = vld [vmem:[%s5384_s7 + $0x1a4] sm:$0xf0] }
 0x221   : > { %v3173_v58 = vor.u32 %v3558_v14, %v3172_v28 }
 0x222   : > { %1713 = vmatpush.msra.mxu0 %v4703_v10  ;;  %v3562_v10 = vld [vmem:[%s5382_s5 + $0xec] sm:$0xf0] }
 0x224   : > { %1714 = vmatpush.msra.mxu0 %v4700_v59  ;;  %v1703_v59 = vld [vmem:[%s401_s29] sm:$0xff] }
 0x226   : > { %1715 = vmatpush.msra.mxu0 %v4697_v57  ;;  %v3524_v57 = vld [vmem:[%s5380_s3] sm:$0xff] }
 0x227   : > { %1800 = vmatpush.bf16.msra.mxu1 %v3524_v57  ;;  %v3538_v57 = vld [vmem:[%s5382_s5 + $0x2c] sm:$0xf0] }
 0x228   : > { %1716 = vmatpush.msra.mxu0 %v4694_v12  ;;  %v3188_v12 = vld [vmem:[%s5382_s5 + $0xe0] sm:$0xf] }
 0x22a   : > { %1717 = vmatpush.msra.mxu0 %v4691_v48  ;;  %v3189_v48 = vor.u32 %v3562_v10, %v3188_v12  ;;  %v3536_v12 = vld [vmem:[%s5382_s5 + $0x24] sm:$0xf] }
 0x22b   : > { %2049 = vmatpush.bf16.msrb.mxu1 %v3201_v40  ;;  %v3102_v40 = vld [vmem:[%s5382_s5 + $0x38] sm:$0xf0] }
 0x22c   : > { %1718 = vmatpush.msra.mxu0 %v4688_v34  ;;  %v3560_v34 = vld [vmem:[%s5382_s5 + $0xe4] sm:$0xf]  ;;  %2010 = vmatpush.bf16.msra.mxu2 %v3189_v48  ;;  %v3132_v48 = vld [vmem:[%s5382_s5 + $0x68] sm:$0xf] }
 0x22e   : > { %1719 = vmatpush.msra.mxu0 %v4685_v6  ;;  %v3190_v6 = vld [vmem:[%s5382_s5 + $0xf0] sm:$0xf0] }
 0x22f   : > { %1720 = vmatmul.f32.vlgmr.msra.gmra.mxu0 %v1703_v59  ;;  %v3193_v17 = vor.u32 %v3560_v34, %v3190_v6  ;;  %2050 = vmatpush.bf16.msrb.mxu1 %v3185_v8  ;;  %v3092_v59 = vld [vmem:[%s5382_s5 + $0x20] sm:$0xf]  ;;  %v3094_v34 = vld [vmem:[%s5382_s5 + $0x30] sm:$0xf0]  ;;  %v3547_v6 = vld [vmem:[%s5382_s5 + $0x74] sm:$0xf0] }
 0x230   : > { %2011 = vmatpush.bf16.msra.mxu2 %v3173_v58  ;;  %2036 = vmatpush.bf16.msrb.mxu0 %v3197_v39  ;;  %v3093_v10 = vor.u32 %v3538_v57, %v3092_v59  ;;  %v3097_v28 = vor.u32 %v3536_v12, %v3094_v34  ;;  %v3133_v14 = vor.u32 %v3547_v6, %v3132_v48  ;;  %v3537_v39 = vld [vmem:[%s5382_s5 + $0x2c] sm:$0xf]  ;;  %v3577_v8 = vld [vmem:[%s5384_s7 + $0x64] sm:$0xf0]  ;;  %v3236_v57 = vld [vmem:[%s5384_s7 + $0x40] sm:$0xf] }
 0x231   : > { %2023 = vmatpush.bf16.msra.mxu3 %v3193_v17  ;;  %v3545_v17 = vld [vmem:[%s5382_s5 + $0x6c] sm:$0xf]  ;;  %v3573_v12 = vld [vmem:[%s5384_s7 + $0x44] sm:$0xf0]  ;;  %v3381_v48 = vor.u32 %v3609_v20, %v3380_v52  ;;  %v3599_v52 = vld [vmem:[%s5384_s7 + $0x114] sm:$0xf0] }
 0x232   : > { %v3137_v58 = vor.u32 %v3545_v17, %v3134_v16  ;;  %v3589_v34 = vld [vmem:[%s5384_s7 + $0xc4] sm:$0xf0]  ;;  %v3237_v16 = vor.u32 %v3573_v12, %v3236_v57  ;;  %v3268_v20 = vld [vmem:[%s5384_s7 + $0x80] sm:$0xf]  ;;  %v3262_v57 = vld [vmem:[%s5384_s7 + $0x78] sm:$0xf0] }
 0x233   : > { %2051 = vmatpush.bf16.msrb.mxu1 %v3169_v19  ;;  %v3452_v19 = vld [vmem:[%s5384_s7 + $0x1f0] sm:$0xf]  ;;  %v3594_v12 = vld [vmem:[%s5384_s7 + $0xf4] sm:$0xf] }
 0x234   : > { %2012 = vmatpush.bf16.msra.mxu2 %v3157_v5  ;;  %2037 = vmatpush.bf16.msrb.mxu0 %v3181_v53  ;;  %v3118_v5 = vld [vmem:[%s5382_s5 + $0x58] sm:$0xf0]  ;;  %v3252_v53 = vld [vmem:[%s5384_s7 + $0x60] sm:$0xf] }
 0x235   : > { %2024 = vmatpush.bf16.msra.mxu3 %v3177_v62  ;;  %v3534_v62 = vld [vmem:[%s5382_s5 + $0xc] sm:$0xf0]  ;;  %v3121_v9 = vor.u32 %v3541_v2, %v3118_v5  ;;  %v3253_v31 = vor.u32 %v3577_v8, %v3252_v53  ;;  %v3364_v5 = vld [vmem:[%s5384_s7 + $0x140] sm:$0xf]  ;;  %v3603_v8 = vld [vmem:[%s5384_s7 + $0x134] sm:$0xf0] }
 0x236   : > { %v3077_v27 = vor.u32 %v3534_v62, %v3076_v13  ;;  %v3436_v13 = vld [vmem:[%s5384_s7 + $0x1d0] sm:$0xf] }
 0x237   : > { %2052 = vmatpush.bf16.msrb.mxu1 %v3153_v0  ;;  %v3625_v0 = vld [vmem:[%s5384_s7 + $0x1e4] sm:$0xf0] }
 0x238   : > { %2013 = vmatpush.bf16.msra.mxu2 %v3141_v32  ;;  %2038 = vmatpush.bf16.msrb.mxu0 %v3165_v45  ;;  %v3105_v32 = vor.u32 %v3537_v39, %v3102_v40  ;;  %v3611_v45 = vld [vmem:[%s5384_s7 + $0x174] sm:$0xf0]  ;;  %v3293_v39 = vor.u32 %v3587_v21, %v3292_v29  ;;  %v3220_v40 = vld [vmem:[%s5384_s7 + $0x20] sm:$0xf]  ;;  %v3390_v29 = vld [vmem:[%s5384_s7 + $0x178] sm:$0xf0] }
 0x239   : > { %2025 = vmatpush.bf16.msra.mxu3 %v3161_v18  ;;  %v3539_v18 = vld [vmem:[%s5382_s5 + $0x34] sm:$0xf0]  ;;  %v3389_v60 = vor.u32 %v3611_v45, %v3388_v47  ;;  %v3348_v45 = vld [vmem:[%s5384_s7 + $0x120] sm:$0xf]  ;;  %v3626_v21 = vld [vmem:[%s5384_s7 + $0x1f4] sm:$0xf] }
 0x23a   : > { %v3101_v43 = vor.u32 %v3539_v18, %v3100_v23  ;;  %v3428_v23 = vld [vmem:[%s5384_s7 + $0x1c0] sm:$0xf]  ;;  %v3621_v18 = vld [vmem:[%s5384_s7 + $0x1c4] sm:$0xf0]  ;;  %v3567_v47 = vld [vmem:[%s5384_s7 + $0x14] sm:$0xf0] }
 0x23b   : > { %2053 = vmatpush.bf16.msrb.mxu1 %v3137_v58  ;;  %v3623_v58 = vld [vmem:[%s5384_s7 + $0x1d4] sm:$0xf0] }
 0x23c   : > { %2014 = vmatpush.bf16.msra.mxu2 %v3125_v7  ;;  %2039 = vmatpush.bf16.msrb.mxu0 %v3149_v54  ;;  %v3627_v7 = vld [vmem:[%s5384_s7 + $0x1f4] sm:$0xf0]  ;;  %v3444_v54 = vld [vmem:[%s5384_s7 + $0x1e0] sm:$0xf] }
 0x23d   : > { %2026 = vmatpush.bf16.msra.mxu3 %v3145_v50  ;;  %v3325_v50 = vor.u32 %v3595_v37, %v3324_v35  ;;  %v3445_v6 = vor.u32 %v3625_v0, %v3444_v54  ;;  %v3429_v35 = vor.u32 %v3621_v18, %v3428_v23  ;;  %v3585_v37 = vld [vmem:[%s5384_s7 + $0xa4] sm:$0xf0]  ;;  %v3404_v54 = vld [vmem:[%s5384_s7 + $0x190] sm:$0xf]  ;;  %v3615_v0 = vld [vmem:[%s5384_s7 + $0x194] sm:$0xf0] }
 0x23f   : > { %2054 = vmatpush.bf16.msrb.mxu1 %v3121_v9  ;;  %v3605_v9 = vld [vmem:[%s5384_s7 + $0x144] sm:$0xf0] }
 0x240   : > { %2015 = vmatpush.bf16.msra.mxu2 %v3109_v42  ;;  %2040 = vmatpush.bf16.msrb.mxu0 %v3133_v14  ;;  %v3085_v42 = vor.u32 %v3535_v49, %v3084_v26  ;;  %v3607_v14 = vld [vmem:[%s5384_s7 + $0x154] sm:$0xf0]  ;;  %v3365_v11 = vor.u32 %v3605_v9, %v3364_v5  ;;  %v3356_v26 = vld [vmem:[%s5384_s7 + $0x130] sm:$0xf]  ;;  %v3318_v5 = vld [vmem:[%s5384_s7 + $0xe8] sm:$0xf0] }
 0x241   : > { %2027 = vmatpush.bf16.msra.mxu3 %v3129_v3  ;;  %v3317_v3 = vor.u32 %v3593_v22, %v3316_v51  ;;  %v3357_v51 = vor.u32 %v3603_v8, %v3356_v26 }
 0x243   : > { %2055 = vmatpush.bf16.msrb.mxu1 %v3105_v32  ;;  %v3619_v32 = vld [vmem:[%s5384_s7 + $0x1b4] sm:$0xf0] }
 0x244   : > { %2016 = vmatpush.bf16.msra.mxu2 %v3093_v10  ;;  %2041 = vmatpush.bf16.msrb.mxu0 %v3117_v33  ;;  %v3300_v10 = vld [vmem:[%s5384_s7 + $0xc0] sm:$0xf] }
 0x245   : > { %2028 = vmatpush.bf16.msra.mxu3 %v3113_v55  ;;  %v3453_v55 = vor.u32 %v3627_v7, %v3452_v19  ;;  %v3301_v62 = vor.u32 %v3589_v34, %v3300_v10  ;;  %v3276_v19 = vld [vmem:[%s5384_s7 + $0x90] sm:$0xf]  ;;  %v3583_v7 = vld [vmem:[%s5384_s7 + $0x94] sm:$0xf0]  ;;  %v3326_v10 = vld [vmem:[%s5384_s7 + $0xf8] sm:$0xf0] }
 0x248   : > { %2017 = vmatpush.bf16.msra.mxu2 %v3077_v27  ;;  %2042 = vmatpush.bf16.msrb.mxu0 %v3101_v43  ;;  %v3571_v27 = vld [vmem:[%s5384_s7 + $0x34] sm:$0xf0]  ;;  %v3420_v43 = vld [vmem:[%s5384_s7 + $0x1b0] sm:$0xf] }
 0x249   : > { %2029 = vmatpush.bf16.msra.mxu3 %v3097_v28  ;;  %v3372_v28 = vld [vmem:[%s5384_s7 + $0x150] sm:$0xf]  ;;  %v3229_v33 = vor.u32 %v3571_v27, %v3228_v25  ;;  %v3421_v22 = vor.u32 %v3619_v32, %v3420_v43  ;;  %v3576_v25 = vld [vmem:[%s5384_s7 + $0x64] sm:$0xf]  ;;  %v3610_v27 = vld [vmem:[%s5384_s7 + $0x174] sm:$0xf] }
 0x24a   : > { %v3373_v2 = vor.u32 %v3607_v14, %v3372_v28  ;;  %v3405_v28 = vor.u32 %v3615_v0, %v3404_v54  ;;  %v3332_v14 = vld [vmem:[%s5384_s7 + $0x100] sm:$0xf]  ;;  %v3393_v18 = vor.u32 %v3610_v27, %v3390_v29  ;;  %v3590_v32 = vld [vmem:[%s5384_s7 + $0xd4] sm:$0xf]  ;;  %v3294_v54 = vld [vmem:[%s5384_s7 + $0xb8] sm:$0xf0] }
 0x24b   : > { %v3568_v0 = vld [vmem:[%s5384_s7 + $0x24] sm:$0xf]  ;;  %v3414_v29 = vld [vmem:[%s5384_s7 + $0x1a8] sm:$0xf0] }
 0x24c   : > { %2460 = vmatpush.bf16.msrb.mxu2 %v3261_v36  ;;  %2043 = vmatpush.bf16.msrb.mxu0 %v3085_v42  ;;  %v3284_v36 = vld [vmem:[%s5384_s7 + $0xa0] sm:$0xf]  ;;  %v3616_v27 = vld [vmem:[%s5384_s7 + $0x1a4] sm:$0xf] }
 0x24d   : > { %2030 = vmatpush.bf16.msra.mxu3 %v3081_v4  ;;  %v3437_v4 = vor.u32 %v3623_v58, %v3436_v13  ;;  %v3329_v58 = vor.u32 %v3594_v12, %v3326_v10  ;;  %v3602_v12 = vld [vmem:[%s5384_s7 + $0x134] sm:$0xf]  ;;  %v3358_v10 = vld [vmem:[%s5384_s7 + $0x138] sm:$0xf0] }
 0x250   : > { %2461 = vmatpush.bf16.msrb.mxu2 %v3253_v31  ;;  %2486 = vmatpush.bf16.msra.mxu0 %v3389_v60  ;;  %v3212_v31 = vld [vmem:[%s5384_s7 + $0x10] sm:$0xf] }
 0x251   : > { %2473 = vmatpush.bf16.msrb.mxu3 %v3325_v50  ;;  %v3285_v50 = vor.u32 %v3585_v37, %v3284_v36  ;;  %v3213_v42 = vor.u32 %v3567_v47, %v3212_v31  ;;  %v3382_v36 = vld [vmem:[%s5384_s7 + $0x168] sm:$0xf0]  ;;  %v3624_v37 = vld [vmem:[%s5384_s7 + $0x1e4] sm:$0xf]  ;;  %v3606_v47 = vld [vmem:[%s5384_s7 + $0x154] sm:$0xf] }
 0x254   : > { %2462 = vmatpush.bf16.msrb.mxu2 %v3245_v41  ;;  %2487 = vmatpush.bf16.msra.mxu0 %v3381_v48  ;;  %v3581_v41 = vld [vmem:[%s5384_s7 + $0x84] sm:$0xf0] }
 0x255   : > { %2474 = vmatpush.bf16.msrb.mxu3 %v3317_v3  ;;  %v3601_v3 = vld [vmem:[%s5384_s7 + $0x124] sm:$0xf0]  ;;  %v3269_v48 = vor.u32 %v3581_v41, %v3268_v20  ;;  %v3586_v41 = vld [vmem:[%s5384_s7 + $0xb4] sm:$0xf] }
 0x256   : > { %v3349_v60 = vor.u32 %v3601_v3, %v3348_v45  ;;  %v3302_v3 = vld [vmem:[%s5384_s7 + $0xc8] sm:$0xf0] }
 0x258   : > { %2463 = vmatpush.bf16.msrb.mxu2 %v3237_v16  ;;  %2488 = vmatpush.bf16.msra.mxu0 %v3373_v2  ;;  %v3396_v16 = vld [vmem:[%s5384_s7 + $0x180] sm:$0xf]  ;;  %v3454_v2 = vld [vmem:[%s5384_s7 + $0x1f8] sm:$0xf0] }
 0x25c   : > { %2464 = vmatpush.bf16.msrb.mxu2 %v3229_v33  ;;  %2489 = vmatpush.bf16.msra.mxu0 %v3365_v11  ;;  %v3246_v11 = vld [vmem:[%s5384_s7 + $0x58] sm:$0xf0] }
 0x260   : > { %2490 = vmatpush.bf16.msra.mxu0 %v3357_v51  ;;  %v3374_v51 = vld [vmem:[%s5384_s7 + $0x158] sm:$0xf0] }
 0x261   : > { %v3377_v45 = vor.u32 %v3606_v47, %v3374_v51 }
 0x264   : > { %2491 = vmatpush.bf16.msra.mxu0 %v3349_v60  ;;  %v3620_v60 = vld [vmem:[%s5384_s7 + $0x1c4] sm:$0xf] }
 0x2ac   : > { %v1721_v44 = vpop.f32.mrf.mxu0 }
 0x2ad   : > { %v1724_v61 = vpack.c.bf16 %v1721_v44, %v1721_v44  ;;  %v3089_v44 = vor.u32 %v3533_v1, %v3086_v30  ;;  %v3221_v30 = vor.u32 %v3569_v24, %v3220_v40  ;;  %v3574_v24 = vld [vmem:[%s5384_s7 + $0x54] sm:$0xf] }
 0x2ae   : > { %v3249_v26 = vor.u32 %v3574_v24, %v3246_v11  ;;  %v3342_v24 = vld [vmem:[%s5384_s7 + $0x118] sm:$0xf0]  ;;  %v3614_v11 = vld [vmem:[%s5384_s7 + $0x194] sm:$0xf] }
 0x2af   : > { %1801 = vmatmul.bf16.vlgmr.msra.gmra.mxu1 %v1724_v61  ;;  %v3308_v61 = vld [vmem:[%s5384_s7 + $0xd0] sm:$0xf]  ;;  %2465 = vmatpush.bf16.msrb.mxu2 %v3221_v30  ;;  %v3572_v30 = vld [vmem:[%s5384_s7 + $0x44] sm:$0xf] }
 0x2b0   : > { %v3309_v59 = vor.u32 %v3591_v38, %v3308_v61  ;;  %2056 = vmatpush.bf16.msrb.mxu1 %v3089_v44  ;;  %v3277_v44 = vor.u32 %v3583_v7, %v3276_v19  ;;  %v3204_v61 = vld [vmem:[%s5384_s7] sm:$0xf]  ;;  %v3565_v38 = vld [vmem:[%s5384_s7 + $0x4] sm:$0xf0]  ;;  %v3438_v19 = vld [vmem:[%s5384_s7 + $0x1d8] sm:$0xf0] }
 0x2b1   : > { %v3205_v34 = vor.u32 %v3565_v38, %v3204_v61  ;;  %v3588_v7 = vld [vmem:[%s5384_s7 + $0xc4] sm:$0xf] }
 0x2b2   : > { %2475 = vmatpush.bf16.msrb.mxu3 %v3309_v59  ;;  %v3578_v59 = vld [vmem:[%s5384_s7 + $0x74] sm:$0xf]  ;;  %v3604_v61 = vld [vmem:[%s5384_s7 + $0x144] sm:$0xf] }
 0x2b3   : > { %2466 = vmatpush.bf16.msrb.mxu2 %v3213_v42  ;;  %v3265_v13 = vor.u32 %v3578_v59, %v3262_v57  ;;  %v3570_v42 = vld [vmem:[%s5384_s7 + $0x34] sm:$0xf]  ;;  %v3297_v59 = vor.u32 %v3586_v41, %v3294_v54  ;;  %v3222_v57 = vld [vmem:[%s5384_s7 + $0x28] sm:$0xf0] }
 0x2b4   : > { %2499 = vmatpush.bf16.msra.mxu1 %v3453_v55  ;;  %v3413_v55 = vor.u32 %v3617_v15, %v3412_v46  ;;  %v3305_v15 = vor.u32 %v3588_v7, %v3302_v3 }
 0x2b6   : > { %2476 = vmatpush.bf16.msrb.mxu3 %v3301_v62  ;;  %v3613_v62 = vld [vmem:[%s5384_s7 + $0x184] sm:$0xf0] }
 0x2b7   : > { %2467 = vmatpush.bf16.msrb.mxu2 %v3205_v34  ;;  %v3397_v9 = vor.u32 %v3613_v62, %v3396_v16  ;;  %v3618_v34 = vld [vmem:[%s5384_s7 + $0x1b4] sm:$0xf]  ;;  %v3600_v62 = vld [vmem:[%s5384_s7 + $0x124] sm:$0xf] }
 0x2b8   : > { %2500 = vmatpush.bf16.msra.mxu1 %v3445_v6 }
 0x2ba   : > { %2477 = vmatpush.bf16.msrb.mxu3 %v3293_v39  ;;  %v3457_v39 = vor.u32 %v3626_v21, %v3454_v2  ;;  %v3582_v21 = vld [vmem:[%s5384_s7 + $0x94] sm:$0xf]  ;;  %v3278_v2 = vld [vmem:[%s5384_s7 + $0x98] sm:$0xf0] }
 0x2bc   : > { %2501 = vmatpush.bf16.msra.mxu1 %v3437_v4  ;;  %v3592_v4 = vld [vmem:[%s5384_s7 + $0xe4] sm:$0xf] }
 0x2bd   : > { %v3321_v40 = vor.u32 %v3592_v4, %v3318_v5  ;;  %v1840_v4 = vld [vmem:[%s5383_s6] sm:$0xf] }
 0x2be   : > { %2478 = vmatpush.bf16.msrb.mxu3 %v3285_v50  ;;  %v3238_v50 = vld [vmem:[%s5384_s7 + $0x48] sm:$0xf0]  ;;  %v1843_v7 = vperm.slane %v1840_v4, 1 }
 0x2bf   : > { %v3241_v31 = vor.u32 %v3572_v30, %v3238_v50  ;;  %v3334_v30 = vld [vmem:[%s5384_s7 + $0x108] sm:$0xf0]  ;;  %v3612_v50 = vld [vmem:[%s5384_s7 + $0x184] sm:$0xf] }
 0x2c0   : > { %2502 = vmatpush.bf16.msra.mxu1 %v3429_v35  ;;  %v3608_v35 = vld [vmem:[%s5384_s7 + $0x164] sm:$0xf] }
 0x2c1   : > { %v3385_v8 = vor.u32 %v3608_v35, %v3382_v36  ;;  %v3406_v35 = vld [vmem:[%s5384_s7 + $0x198] sm:$0xf0]  ;;  %v3270_v36 = vld [vmem:[%s5384_s7 + $0x88] sm:$0xf0] }
 0x2c2   : > { %2479 = vmatpush.bf16.msrb.mxu3 %v3277_v44  ;;  %v3230_v44 = vld [vmem:[%s5384_s7 + $0x38] sm:$0xf0] }
 0x2c3   : > { %v3233_v38 = vor.u32 %v3570_v42, %v3230_v44 }
 0x2c4   : > { %2503 = vmatpush.bf16.msra.mxu1 %v3421_v22  ;;  %v3622_v22 = vld [vmem:[%s5384_s7 + $0x1d4] sm:$0xf] }
 0x2c5   : > { %v3441_v46 = vor.u32 %v3622_v22, %v3438_v19  ;;  %v1842_v19 = vperm.slane %v1840_v4, 0 }
 0x2c6   : > { %2480 = vmatpush.bf16.msrb.mxu3 %v3269_v48  ;;  %v3422_v48 = vld [vmem:[%s5384_s7 + $0x1b8] sm:$0xf0] }
 0x2c7   : > { %v3425_v16 = vor.u32 %v3618_v34, %v3422_v48 }
 0x2c8   : > { %2504 = vmatpush.bf16.msra.mxu1 %v3413_v55  ;;  %v3430_v55 = vld [vmem:[%s5384_s7 + $0x1c8] sm:$0xf0] }
 0x2c9   : > { %v3433_v20 = vor.u32 %v3620_v60, %v3430_v55 }
 0x2cc   : > { %2505 = vmatpush.bf16.msra.mxu1 %v3405_v28  ;;  %v3225_v28 = vor.u32 %v3568_v0, %v3222_v57 }
 0x2d0   : > { %2506 = vmatpush.bf16.msra.mxu1 %v3397_v9  ;;  %v3417_v9 = vor.u32 %v3616_v27, %v3414_v29 }
 0x32c   : > { %v1802_v17 = vpop.f32.mrf.mxu1 }
 0x32d   : > { %v1803_v63 = vadd.f32 %v3641_v56, %v1802_v17  ;;  %v3340_v56 = vld [vmem:[%s5384_s7 + $0x110] sm:$0xf]  ;;  %v3597_v17 = vld [vmem:[%s5384_s7 + $0x104] sm:$0xf0] }
 0x32e   : > { %v3341_v6 = vor.u32 %v3599_v52, %v3340_v56  ;;  %v3333_v33 = vor.u32 %v3597_v17, %v3332_v14  ;;  %v3366_v56 = vld [vmem:[%s5384_s7 + $0x148] sm:$0xf0]  ;;  %v3361_v17 = vor.u32 %v3602_v12, %v3358_v10 }
 0x32f   : > { %3643 = vtanh.f32 %v1803_v63  ;;  %v3254_v63 = vld [vmem:[%s5384_s7 + $0x68] sm:$0xf0]  ;;  %v3369_v52 = vor.u32 %v3604_v61, %v3366_v56 }
 0x330   : > { %2492 = vmatpush.bf16.msra.mxu0 %v3341_v6  ;;  %v3257_v23 = vor.u32 %v3576_v25, %v3254_v63  ;;  %v3584_v6 = vld [vmem:[%s5384_s7 + $0xa4] sm:$0xf]  ;;  %v3286_v14 = vld [vmem:[%s5384_s7 + $0xa8] sm:$0xf0] }
 0x331   : > { %v3289_v25 = vor.u32 %v3584_v6, %v3286_v14  ;;  %v3350_v63 = vld [vmem:[%s5384_s7 + $0x128] sm:$0xf0] }
 0x334   : > { %v1804_v53 = vpop.f32.mrf.mxu1  ;;  %2493 = vmatpush.bf16.msra.mxu0 %v3333_v33  ;;  %v3353_v33 = vor.u32 %v3600_v62, %v3350_v63 }
 0x335   : > { %v3644_v49 = vpop.eup %3643  ;;  %v3446_v53 = vld [vmem:[%s5384_s7 + $0x1e8] sm:$0xf0] }
 0x336   : > { %v1807_v1 = vpack.c.bf16 %v3644_v49, %v3644_v49  ;;  %v3449_v43 = vor.u32 %v3624_v37, %v3446_v53  ;;  %v3310_v49 = vld [vmem:[%s5384_s7 + $0xd8] sm:$0xf0]  ;;  %v1844_v37 = vperm.slane %v1840_v4, 2  ;;  %v1845_v53 = vperm.slane %v1840_v4, 3 }
 0x338   : > { %2018 = vmatmul.bf16.vlgmr.msra.gmra.mxu2 %v1807_v1  ;;  %2031 = vmatmul.bf16.vlgmr.msra.gmra.mxu3 %v1807_v1 }
 0x339   : > { %2044 = vmatmul.bf16.vlgmr.msrb.gmra.mxu0 %v1807_v1  ;;  %2057 = vmatmul.bf16.vlgmr.msrb.gmra.mxu1 %v1807_v1  ;;  %v3313_v1 = vor.u32 %v3590_v32, %v3310_v49  ;;  %v3409_v32 = vor.u32 %v3614_v11, %v3406_v35  ;;  %v3596_v49 = vld [vmem:[%s5384_s7 + $0x104] sm:$0xf] }
 0x33a   : > { %2512 = vmatpush.bf16.msra.mxu2 %v3265_v13  ;;  %2525 = vmatpush.bf16.msra.mxu3 %v3329_v58  ;;  %v3566_v13 = vld [vmem:[%s5384_s7 + $0x14] sm:$0xf]  ;;  %v3214_v58 = vld [vmem:[%s5384_s7 + $0x18] sm:$0xf0]  ;;  %v3337_v3 = vor.u32 %v3596_v49, %v3334_v30  ;;  %v3642_v49 = vld [vmem:[#allocation2] ss:$0 sm:$0xff] }
 0x33b   : > { %2538 = vmatpush.bf16.msrb.mxu0 %v3393_v18  ;;  %2551 = vmatpush.bf16.msrb.mxu1 %v3457_v39  ;;  %v3217_v5 = vor.u32 %v3566_v13, %v3214_v58  ;;  %v3206_v18 = vld [vmem:[%s5384_s7 + $0x8] sm:$0xf0]  ;;  %v3598_v39 = vld [vmem:[%s5384_s7 + $0x114] sm:$0xf] }
 0x33e   : > { %2513 = vmatpush.bf16.msra.mxu2 %v3257_v23  ;;  %2526 = vmatpush.bf16.msra.mxu3 %v3321_v40  ;;  %v3564_v23 = vld [vmem:[%s5384_s7 + $0x4] sm:$0xf]  ;;  %v3281_v40 = vor.u32 %v3582_v21, %v3278_v2 }
 0x33f   : > { %2539 = vmatpush.bf16.msrb.mxu0 %v3385_v8  ;;  %2552 = vmatpush.bf16.msrb.mxu1 %v3449_v43  ;;  %v3209_v8 = vor.u32 %v3564_v23, %v3206_v18  ;;  %v3345_v43 = vor.u32 %v3598_v39, %v3342_v24  ;;  %v2566_v39 = vld [vmem:[%s5386_s9] sm:$0x3] }
 0x340   : > { %v2568_v35 = vperm.slane %v2566_v39, 0 }
 0x342   : > { %2514 = vmatpush.bf16.msra.mxu2 %v3249_v26  ;;  %2527 = vmatpush.bf16.msra.mxu3 %v3313_v1  ;;  %v3580_v26 = vld [vmem:[%s5384_s7 + $0x84] sm:$0xf] }
 0x343   : > { %2540 = vmatpush.bf16.msrb.mxu0 %v3377_v45  ;;  %2553 = vmatpush.bf16.msrb.mxu1 %v3441_v46  ;;  %v3273_v1 = vor.u32 %v3580_v26, %v3270_v36  ;;  %v2569_v26 = vperm.slane %v2566_v39, 1 }
 0x346   : > { %2515 = vmatpush.bf16.msra.mxu2 %v3241_v31  ;;  %2528 = vmatpush.bf16.msra.mxu3 %v3305_v15  ;;  %v3398_v31 = vld [vmem:[%s5384_s7 + $0x188] sm:$0xf0] }
 0x347   : > { %2541 = vmatpush.bf16.msrb.mxu0 %v3369_v52  ;;  %2554 = vmatpush.bf16.msrb.mxu1 %v3433_v20  ;;  %v3401_v46 = vor.u32 %v3612_v50, %v3398_v31 }
 0x34a   : > { %2516 = vmatpush.bf16.msra.mxu2 %v3233_v38  ;;  %2529 = vmatpush.bf16.msra.mxu3 %v3297_v59 }
 0x34b   : > { %2542 = vmatpush.bf16.msrb.mxu0 %v3361_v17  ;;  %2555 = vmatpush.bf16.msrb.mxu1 %v3425_v16 }
 0x34e   : > { %2517 = vmatpush.bf16.msra.mxu2 %v3225_v28  ;;  %2530 = vmatpush.bf16.msra.mxu3 %v3289_v25  ;;  %v2134_v28 = vld [vmem:[%s5385_s8] sm:$0x3] }
 0x34f   : > { %2543 = vmatpush.bf16.msrb.mxu0 %v3353_v33  ;;  %2556 = vmatpush.bf16.msrb.mxu1 %v3417_v9  ;;  %v2136_v16 = vperm.slane %v2134_v28, 0  ;;  %v2137_v29 = vperm.slane %v2134_v28, 1 }
 0x352   : > { %2518 = vmatpush.bf16.msra.mxu2 %v3217_v5  ;;  %2531 = vmatpush.bf16.msra.mxu3 %v3281_v40 }
 0x353   : > { %2544 = vmatpush.bf16.msrb.mxu0 %v3345_v43  ;;  %2557 = vmatpush.bf16.msrb.mxu1 %v3409_v32 }
 0x356   : > { %2519 = vmatpush.bf16.msra.mxu2 %v3209_v8  ;;  %2532 = vmatpush.bf16.msra.mxu3 %v3273_v1 }
 0x357   : > { %2545 = vmatpush.bf16.msrb.mxu0 %v3337_v3  ;;  %2558 = vmatpush.bf16.msrb.mxu1 %v3401_v46 }
 0x3b6   : > { %v2045_v47 = vpop.f32.mrf.mxu0  ;;  %v2058_v51 = vpop.f32.mrf.mxu1 }
 0x3b7   : > { %v2046_v22 = vadd.f32 %v2045_v47, %v1844_v37  ;;  %v2059_v45 = vadd.f32 %v2058_v51, %v1845_v53 }
 0x3b9   : > { %v2064_v15 = vmax.f32 %v2046_v22, 0.0  ;;  %v2065_v42 = vmax.f32 %v2059_v45, 0.0 }
 0x3bb   : > { %v2019_v44 = vpop.f32.mrf.mxu2  ;;  %v2032_v61 = vpop.f32.mrf.mxu3  ;;  %v2068_v38 = vpack.c.bf16 %v2064_v15, %v2064_v15  ;;  %v2069_v56 = vpack.c.bf16 %v2065_v42, %v2065_v42 }
 0x3bc   : > { %v2020_v60 = vadd.f32 %v2019_v44, %v1842_v19  ;;  %v2033_v55 = vadd.f32 %v2032_v61, %v1843_v7 }
 0x3bd   : > { %2494 = vmatmul.bf16.vlgmr.msra.gmra.mxu0 %v2068_v38  ;;  %2507 = vmatmul.bf16.vlgmr.msra.gmra.mxu1 %v2069_v56 }
 0x3be   : > { %v2062_v52 = vmax.f32 %v2020_v60, 0.0  ;;  %v2063_v20 = vmax.f32 %v2033_v55, 0.0  ;;  %v2047_v41 = vpop.f32.mrf.mxu0  ;;  %v2060_v54 = vpop.f32.mrf.mxu1 }
 0x3c0   : > { %v2066_v0 = vpack.c.bf16 %v2062_v52, %v2062_v52  ;;  %v2067_v59 = vpack.c.bf16 %v2063_v20, %v2063_v20 }
 0x3c2   : > { %2468 = vmatmul.bf16.vlgmr.msrb.gmra.mxu2 %v2066_v0  ;;  %2481 = vmatmul.bf16.vlgmr.msrb.gmra.mxu3 %v2067_v59 }
 0x3c3   : > { %v2021_v57 = vpop.f32.mrf.mxu2  ;;  %v2034_v12 = vpop.f32.mrf.mxu3 }
 0x3cd   : > { %2546 = vmatmul.bf16.vlgmr.msrb.gmra.mxu0 %v2068_v38  ;;  %2559 = vmatmul.bf16.vlgmr.msrb.gmra.mxu1 %v2069_v56 }
 0x3d2   : > { %2520 = vmatmul.bf16.vlgmr.msra.gmra.mxu2 %v2066_v0  ;;  %2533 = vmatmul.bf16.vlgmr.msra.gmra.mxu3 %v2067_v59 }
 0x43a   : > { %v2495_v10 = vpop.f32.mrf.mxu0  ;;  %v2508_v34 = vpop.f32.mrf.mxu1 }
 0x442   : > { %v2497_v48 = vpop.f32.mrf.mxu0  ;;  %v2510_v6 = vpop.f32.mrf.mxu1 }
 0x445   : > { %v2469_v14 = vpop.f32.mrf.mxu2  ;;  %v2482_v17 = vpop.f32.mrf.mxu3 }
 0x446   : > { %v2470_v62 = vadd.f32 %v2469_v14, %v2136_v16 }
 0x448   : > { %v2483_v27 = vadd.f32 %v2482_v17, %v2470_v62 }
 0x44a   : > { %v2547_v13 = vpop.f32.mrf.mxu0  ;;  %v2560_v58 = vpop.f32.mrf.mxu1  ;;  %v2496_v4 = vadd.f32 %v2495_v10, %v2483_v27 }
 0x44c   : > { %v2509_v23 = vadd.f32 %v2508_v34, %v2496_v4 }
 0x44d   : > { %v2471_v25 = vpop.f32.mrf.mxu2  ;;  %v2484_v63 = vpop.f32.mrf.mxu3 }
 0x44e   : > { %v2564_v24 = vmax.f32 %v2509_v23, 0.0 }
 0x450   : > { %v2572_v8 = vmul.f32 %v2568_v35, %v2564_v24 }
 0x452   : > { %v2549_v21 = vpop.f32.mrf.mxu0  ;;  %v2562_v2 = vpop.f32.mrf.mxu1 }
 0x455   : > { %v2521_v5 = vpop.f32.mrf.mxu2  ;;  %v2534_v33 = vpop.f32.mrf.mxu3 }
 0x456   : > { %v2522_v9 = vadd.f32 %v2521_v5, %v2137_v29 }
 0x458   : > { %v2535_v18 = vadd.f32 %v2534_v33, %v2522_v9 }
 0x45a   : > { %v2548_v40 = vadd.f32 %v2547_v13, %v2535_v18 }
 0x45c   : > { %v2561_v11 = vadd.f32 %v2560_v58, %v2548_v40 }
 0x45d   : > { %v2523_v36 = vpop.f32.mrf.mxu2  ;;  %v2536_v37 = vpop.f32.mrf.mxu3 }
 0x45e   : > { %v2565_v53 = vmax.f32 %v2561_v11, 0.0 }
 0x460   : > { %v2573_v43 = vmul.f32 %v2569_v26, %v2565_v53 }
 0x462   : > { %v2574_v32 = vadd.f32 %v2573_v43, %v2572_v8 }
 0x464   : > { %2575 = vadd.xlane.f32.xlu1 %v2574_v32 }
 0x4d7   : > { %v2576_v1 = vpop.xlane.xlu1 %2575 }
 0x4d8   : > { %v2581_v30 = vadd.f32 %v3642_v49, %v2576_v1 }
 0x4da   : > { %2583 = vst.msk [vmem:[%s405_s15] sm:$0xff] %vm2582_vm4, %v2581_v30 }
 0x4db PF: > { %s23_s19 = sadd.s32 1, %s3651_s19  }
 0x4dc   : > { %p20_p5 = scmp.ge.s32.totalorder %s23_s19, 4  }
 0x4de   :  { %22 = sbr.rel (!%p20_p5) target bundleno = 3 (0x3), region = 97 }

</bundles_post_ra>
